<compile_context>
chip_gen: v7x
topology: tpu7x:2x2x1
jax: 0.10.0
libtpu: 0.0.40
codegen_flags: <defaults>
</compile_context>

<pallas_src>
from functools import partial

import jax
import jax.numpy as jnp
from jax.experimental import pallas as pl
from jax.experimental.pallas import tpu as pltpu

# -------------------- model config (small, synthetic) --------------------
RES, PATCH, WIDTH, LAYERS, HEADS = 16, 8, 64, 2, 1        # vision_heads = width // 64
GRID = RES // PATCH                                       # 2
TOKENS = GRID * GRID + 1                                  # 4 patches + cls = 5
HEAD_DIM = WIDTH // HEADS
DPATCH = 3 * PATCH * PATCH                                # 192
HIDDEN_MLP_LAYERS = [32]                                  # ClassifierHeads hidden layers
N_CLASSES = 1
N_STATE = 2 * N_CLASSES + 1                               # 3
N_ACTION = N_CLASSES + 1                                  # 2
N_OUT = N_STATE + N_ACTION                                # merged heads output
LN_EPS = 1e-5

assert HEADS == 1                     # width=64 -> single head; attention below assumes this
assert len(HIDDEN_MLP_LAYERS) == 1    # merged-head packing below assumes one hidden layer
# TODO(synk): extend merged-head packing (block-diagonal per layer) if more hidden layers
#             or HEADS > 1 configurations are ever needed.


# -------------------- in-kernel helpers --------------------
def _norm(x):
    # layernorm statistics only (affines are folded into the following matmuls,
    # except ln_pre which keeps its affine explicitly); f32 math (v5e-safe).
    mu = jnp.mean(x, axis=-1, keepdims=True)
    xc = x - mu
    var = jnp.mean(xc * xc, axis=-1, keepdims=True)
    return xc * jax.lax.rsqrt(var + LN_EPS)


def _mm(a, w, b):
    # bf16 MXU matmul, f32 accumulation, bias added in f32
    return jnp.dot(a.astype(jnp.bfloat16), w, preferred_element_type=jnp.float32) + b


# -------------------- fused kernel: whole ClipClassifier forward --------------------
def _clip_fused_kernel(patch_ref, tokb_ref, wpatch_ref, lnpre_ref,
                       wattn_ref, wfc_ref, wproj_ref, bvec_ref, bfc_ref,
                       whead1_ref, bhead1_ref, whead2_ref, bhead2_ref,
                       out_ref):
    m = patch_ref.shape[0]                    # Bt * TOKENS  (static)
    bt = m // TOKENS

    # patch embedding; (x/255 - mean)/std preprocessing is folded into w_patch,
    # cls token + positional embedding folded into tok_bias (tiled to [M, W]).
    x = _mm(patch_ref[...], wpatch_ref[...], tokb_ref[...])           # [M, W] f32
    # ln_pre keeps its affine (its output feeds the residual stream)
    x = _norm(x) * lnpre_ref[0] + lnpre_ref[1]

    for l in range(LAYERS):                                           # static unroll
        # ---- attention; ln1 affine + 1/sqrt(d) scale pre-folded into w_q/k/v ----
        h = _norm(x)
        q = _mm(h, wattn_ref[4 * l + 0], bvec_ref[5 * l + 0])         # [M, W]
        k = _mm(h, wattn_ref[4 * l + 1], bvec_ref[5 * l + 1])
        v = _mm(h, wattn_ref[4 * l + 2], bvec_ref[5 * l + 2])
        # per-image attention on the [Bt, T, W] view (HEADS == 1)
        qb = q.reshape(bt, TOKENS, WIDTH).astype(jnp.bfloat16)
        kb = k.reshape(bt, TOKENS, WIDTH).astype(jnp.bfloat16)
        vb = v.reshape(bt, TOKENS, WIDTH).astype(jnp.bfloat16)
        s = jnp.einsum("bqd,bkd->bqk", qb, kb,
                       preferred_element_type=jnp.float32)            # [Bt, T, T]
        p = jnp.exp(s - jnp.max(s, axis=-1, keepdims=True))
        denom = jnp.sum(p, axis=-1, keepdims=True)
        o = jnp.einsum("bqk,bkd->bqd", p.astype(jnp.bfloat16), vb,
                       preferred_element_type=jnp.float32)
        attn = (o * pl.reciprocal(denom, approx=True)).reshape(m, WIDTH)
        x = x + _mm(attn, wattn_ref[4 * l + 3], bvec_ref[5 * l + 3])

        # ---- MLP; ln2 affine folded into w_fc / b_fc ----
        h = _mm(_norm(x), wfc_ref[l], bfc_ref[l])                     # [M, 4W]
        h = h * jax.nn.sigmoid(1.702 * h)                             # QuickGELU
        x = x + _mm(h, wproj_ref[l], bvec_ref[5 * l + 4])

    # ---- ln_post (affine folded into head layer-1) + merged classifier heads ----
    cls = x.reshape(bt, TOKENS, WIDTH)[:, 0, :]                       # [Bt, W]
    h = jnp.maximum(_mm(_norm(cls), whead1_ref[...], bhead1_ref[...]), 0.0)
    out = _mm(h, whead2_ref[...], bhead2_ref[...])                    # [Bt, N_OUT]
    out_ref[...] = out.astype(out_ref.dtype)


# -------------------- deterministic parameter init (PyTorch layout) --------------------
def init_params(key):
    keys = iter(jax.random.split(key, 128))

    def w(shape, s=0.02):
        return s * jax.random.normal(next(keys), shape, jnp.float32)

    zeros = lambda n: jnp.zeros((n,), jnp.float32)
    ones = lambda n: jnp.ones((n,), jnp.float32)

    p = {
        "conv1_w": w((WIDTH, 3, PATCH, PATCH)),     # Conv2d(3, width, patch, stride=patch, bias=False)
        "class_embedding": w((WIDTH,)),
        "positional_embedding": w((TOKENS, WIDTH)),
        "ln_pre_g": ones(WIDTH), "ln_pre_b": zeros(WIDTH),
        "ln_post_g": ones(WIDTH), "ln_post_b": zeros(WIDTH),
        "blocks": [],
    }
    for _ in range(LAYERS):
        p["blocks"].append(dict(
            ln1_g=ones(WIDTH), ln1_b=zeros(WIDTH),
            in_proj_w=w((3 * WIDTH, WIDTH)), in_proj_b=zeros(3 * WIDTH),
            out_proj_w=w((WIDTH, WIDTH)), out_proj_b=zeros(WIDTH),
            ln2_g=ones(WIDTH), ln2_b=zeros(WIDTH),
            c_fc_w=w((4 * WIDTH, WIDTH)), c_fc_b=zeros(4 * WIDTH),
            c_proj_w=w((WIDTH, 4 * WIDTH)), c_proj_b=zeros(WIDTH),
        ))

    layer_sizes = [WIDTH] + HIDDEN_MLP_LAYERS
    p["state_mlp"] = [dict(w=w((layer_sizes[i + 1], layer_sizes[i])), b=zeros(layer_sizes[i + 1]))
                      for i in range(len(layer_sizes) - 1)]
    p["action_mlp"] = [dict(w=w((layer_sizes[i + 1], layer_sizes[i])), b=zeros(layer_sizes[i + 1]))
                       for i in range(len(layer_sizes) - 1)]
    p["state_layer_w"] = w((N_STATE, layer_sizes[-1]))
    p["state_layer_b"] = zeros(N_STATE)
    p["action_layer_w"] = w((N_ACTION, layer_sizes[-1]))
    p["action_layer_b"] = zeros(N_ACTION)
    return p


# -------------------- one-time weight prep: fold / split / transpose / stack / cast --------------------
def prepare_params(p):
    f32, bf16 = jnp.float32, jnp.bfloat16
    scale = HEAD_DIM ** -0.5
    mean = jnp.array([0.48145466, 0.4578275, 0.40821073], f32)
    std = jnp.array([0.26862954, 0.26130258, 0.27577711], f32)
    cscale = 1.0 / (255.0 * std)                               # per input channel
    coffset = -mean / std

    # fold (x/255 - mean)/std into the patch-embed matmul (conv1 has no bias)
    w_conv = p["conv1_w"]                                      # [W, 3, P, P]
    w_patch = (w_conv * cscale[None, :, None, None]).reshape(WIDTH, DPATCH).T   # [DPATCH, W]
    patch_bias = jnp.einsum("c,ocij->o", coffset, w_conv)      # [W]
    pos = p["positional_embedding"]
    tok_bias = jnp.concatenate(
        [(p["class_embedding"] + pos[0])[None, :],             # cls-token row
         patch_bias[None, :] + pos[1:]], axis=0)               # [T, W]

    w_attn, b_vec, w_fc, b_fc, w_proj = [], [], [], [], []
    for blk in p["blocks"]:
        g1, b1 = blk["ln1_g"], blk["ln1_b"]
        Wq, Wk, Wv = (blk["in_proj_w"][i * WIDTH:(i + 1) * WIDTH] for i in range(3))
        bq, bk, bv = (blk["in_proj_b"][i * WIDTH:(i + 1) * WIDTH] for i in range(3))
        # fold ln1 affine (and the attention scale into q)
        wq_f = scale * (g1[:, None] * Wq.T); bq_f = scale * (b1 @ Wq.T + bq)
        wk_f = g1[:, None] * Wk.T;           bk_f = b1 @ Wk.T + bk
        wv_f = g1[:, None] * Wv.T;           bv_f = b1 @ Wv.T + bv
        wo = blk["out_proj_w"].T;            bo = blk["out_proj_b"]
        # fold ln2 affine into c_fc
        g2, b2 = blk["ln2_g"], blk["ln2_b"]
        wfc_f = g2[:, None] * blk["c_fc_w"].T
        bfc_f = b2 @ blk["c_fc_w"].T + blk["c_fc_b"]
        wpr = blk["c_proj_w"].T;             bpr = blk["c_proj_b"]

        w_attn += [wq_f, wk_f, wv_f, wo]                       # 4 per layer
        b_vec += [bq_f, bk_f, bv_f, bo, bpr]                   # 5 per layer
        w_fc.append(wfc_f); b_fc.append(bfc_f[None, :]); w_proj.append(wpr)

    # merged classifier heads; ln_post affine folded into the first hidden layer
    gp, bp = p["ln_post_g"], p["ln_post_b"]
    sw0, sb0 = p["state_mlp"][0]["w"], p["state_mlp"][0]["b"]   # [H1, W], [H1]
    aw0, ab0 = p["action_mlp"][0]["w"], p["action_mlp"][0]["b"]
    H1 = HIDDEN_MLP_LAYERS[-1]
    w_head1 = jnp.concatenate([gp[:, None] * sw0.T, gp[:, None] * aw0.T], axis=1)  # [W, 2*H1]
    b_head1 = jnp.concatenate([bp @ sw0.T + sb0, bp @ aw0.T + ab0])[None, :]       # [1, 2*H1]
    w_head2 = jnp.zeros((2 * H1, N_OUT), f32)                   # block-diagonal final layer
    w_head2 = w_head2.at[:H1, :N_STATE].set(p["state_layer_w"].T)
    w_head2 = w_head2.at[H1:, N_STATE:].set(p["action_layer_w"].T)
    b_head2 = jnp.concatenate([p["state_layer_b"], p["action_layer_b"]])[None, :]   # [1, N_OUT]

    return {
        "tok_bias": tok_bias.astype(f32),                                  # [T, W]
        "w_patch": w_patch.astype(bf16),                                   # [DPATCH, W]
        "ln_pre": jnp.stack([p["ln_pre_g"], p["ln_pre_b"]])[:, None, :].astype(f32),  # [2, 1, W]
        "w_attn": jnp.stack(w_attn).astype(bf16),                          # [L*4, W, W]
        "w_fc": jnp.stack(w_fc).astype(bf16),                              # [L, W, 4W]
        "w_proj": jnp.stack(w_proj).astype(bf16),                          # [L, 4W, W]
        "b_vec": jnp.stack(b_vec)[:, None, :].astype(f32),                 # [L*5, 1, W]
        "b_fc": jnp.stack(b_fc).astype(f32),                               # [L, 1, 4W]
        "w_head1": w_head1.astype(bf16),                                   # [W, 2*H1]
        "b_head1": b_head1.astype(f32),                                    # [1, 2*H1]
        "w_head2": w_head2.astype(bf16),                                   # [2*H1, N_OUT]
        "b_head2": b_head2.astype(f32),                                    # [1, N_OUT]
    }


# -------------------- forward pass (single pallas_call, batch-tiled grid) --------------------
def _const_spec(a):
    nd = a.ndim
    return pl.BlockSpec(a.shape, lambda i, _nd=nd: (0,) * _nd)   # resident across grid


@partial(jax.jit, static_argnames=("block_b",))
def clip_classifier_forward(prep, imgs, block_b=64):
    B = imgs.shape[0]
    # Batch-tile size: Bt=64 -> 320 matmul rows (fills the 256-row MXU on v6e/v7x;
    # use block_b=32 for v5e's 128-row MXU).  Keep >=2 grid steps for large B so
    # the "parallel" axis feeds both TensorCores on v7x, and keep Bt a multiple
    # of 8 whenever there is more than one grid step (sublane alignment).
    if B <= block_b:
        bt = B // 2 if (B >= 64 and B % 16 == 0) else B
    else:
        bt = max(8, (block_b // 8) * 8)
    steps = -(-B // bt)
    b_pad = steps * bt

    x = imgs.astype(jnp.float32)
    if b_pad != B:
        x = jnp.pad(x, ((0, b_pad - B), (0, 0), (0, 0), (0, 0)))
    # patchify NHWC: [Bp,H,W,3] -> [Bp, GRID*GRID, 3*P*P] with (c, ph, pw) flatten order
    x = x.reshape(b_pad, GRID, PATCH, GRID, PATCH, 3)
    x = jnp.transpose(x, (0, 1, 3, 5, 2, 4)).reshape(b_pad, GRID * GRID, DPATCH)
    patches = jnp.pad(x, ((0, 0), (1, 0), (0, 0)))               # row 0 zeros = cls slot
    patches2d = patches.reshape(b_pad * TOKENS, DPATCH)          # dense sublane packing

    m = bt * TOKENS
    tok_bias = jnp.tile(prep["tok_bias"], (bt, 1))               # [M, W] per-token bias

    weights = [tok_bias, prep["w_patch"], prep["ln_pre"], prep["w_attn"],
               prep["w_fc"], prep["w_proj"], prep["b_vec"], prep["b_fc"],
               prep["w_head1"], prep["b_head1"], prep["w_head2"], prep["b_head2"]]

    # advisory cost estimate so XLA schedules the fused call sensibly
    H1 = HIDDEN_MLP_LAYERS[-1]
    flops_tok = 2 * DPATCH * WIDTH + LAYERS * (
        2 * WIDTH * 3 * WIDTH + 4 * TOKENS * WIDTH + 2 * WIDTH * WIDTH
        + 4 * WIDTH * 4 * WIDTH)
    flops = b_pad * (TOKENS * flops_tok + 2 * WIDTH * 2 * H1 + 2 * 2 * H1 * N_OUT)
    transcendentals = b_pad * LAYERS * TOKENS * (TOKENS + 4 * WIDTH)
    bytes_weights = sum(int(a.size) * a.dtype.itemsize for a in weights)
    bytes_accessed = int(patches2d.size) * 4 + bytes_weights + b_pad * N_OUT * 4

    out = pl.pallas_call(
        _clip_fused_kernel,
        grid=(steps,),
        in_specs=[pl.BlockSpec((m, DPATCH), lambda i: (i, 0))] +
                 [_const_spec(a) for a in weights],
        out_specs=pl.BlockSpec((bt, N_OUT), lambda i: (i, 0)),
        out_shape=jax.ShapeDtypeStruct((b_pad, N_OUT), jnp.float32),
        compiler_params=pltpu.CompilerParams(
            dimension_semantics=("parallel",)),
        cost_estimate=pl.CostEstimate(flops=int(flops),
                                      transcendentals=int(transcendentals),
                                      bytes_accessed=int(bytes_accessed)),
    )(patches2d, *weights)

    # split the merged-head output outside the kernel (layout plumbing only)
    return {"state": out[:B, :N_STATE], "action": out[:B, N_STATE:]}


if __name__ == "__main__":
    key = jax.random.PRNGKey(0)
    pkey, xkey = jax.random.split(key)
    params = init_params(pkey)
    prep = prepare_params(params)                 # one-time fold / split / stack / cast
    imgs = jax.random.uniform(xkey, (2, RES, RES, 3), jnp.float32, 0.0, 255.0)  # NHWC, [0, 255]

    out = clip_classifier_forward(prep, imgs)
    jax.block_until_ready(out)

    assert out["state"].shape == (2, N_STATE)
    assert out["action"].shape == (2, N_ACTION)
    assert jnp.all(jnp.isfinite(out["state"])) and jnp.all(jnp.isfinite(out["action"]))
    print("KERNEL_OK")
</pallas_src>

<mosaic_0001>
module attributes {stable_mosaic.version = 11 : i64} {
  func.func @_clip_fused_kernel(%arg0: i32, %arg1: memref<10x192xf32, #tpu.memory_space<vmem>>, %arg2: memref<10x64xf32, #tpu.memory_space<vmem>>, %arg3: memref<192x64xbf16, #tpu.memory_space<vmem>>, %arg4: memref<2x1x64xf32, #tpu.memory_space<vmem>>, %arg5: memref<8x64x64xbf16, #tpu.memory_space<vmem>>, %arg6: memref<2x64x256xbf16, #tpu.memory_space<vmem>>, %arg7: memref<2x256x64xbf16, #tpu.memory_space<vmem>>, %arg8: memref<10x1x64xf32, #tpu.memory_space<vmem>>, %arg9: memref<2x1x256xf32, #tpu.memory_space<vmem>>, %arg10: memref<64x64xbf16, #tpu.memory_space<vmem>>, %arg11: memref<1x64xf32, #tpu.memory_space<vmem>>, %arg12: memref<64x5xbf16, #tpu.memory_space<vmem>>, %arg13: memref<1x5xf32, #tpu.memory_space<vmem>>, %arg14: memref<2x5xf32, #tpu.memory_space<vmem>>) attributes {dimension_semantics = [#tpu.dimension_semantics<parallel>], iteration_bounds = array<i64: 1>, scalar_prefetch = 0 : i64, scratch_operands = 0 : i64, tpu.core_type = #tpu.core_type<tc>, window_params = [{transform_indices = @transform_0, window_bounds = array<i64: 10, 192>}, {pipeline_mode = #tpu.pipeline_mode<synchronous>, transform_indices = @transform_1, window_bounds = array<i64: 10, 64>}, {pipeline_mode = #tpu.pipeline_mode<synchronous>, transform_indices = @transform_2, window_bounds = array<i64: 192, 64>}, {pipeline_mode = #tpu.pipeline_mode<synchronous>, transform_indices = @transform_3, window_bounds = array<i64: 2, 1, 64>}, {pipeline_mode = #tpu.pipeline_mode<synchronous>, transform_indices = @transform_4, window_bounds = array<i64: 8, 64, 64>}, {pipeline_mode = #tpu.pipeline_mode<synchronous>, transform_indices = @transform_5, window_bounds = array<i64: 2, 64, 256>}, {pipeline_mode = #tpu.pipeline_mode<synchronous>, transform_indices = @transform_6, window_bounds = array<i64: 2, 256, 64>}, {pipeline_mode = #tpu.pipeline_mode<synchronous>, transform_indices = @transform_7, window_bounds = array<i64: 10, 1, 64>}, {pipeline_mode = #tpu.pipeline_mode<synchronous>, transform_indices = @transform_8, window_bounds = array<i64: 2, 1, 256>}, {pipeline_mode = #tpu.pipeline_mode<synchronous>, transform_indices = @transform_9, window_bounds = array<i64: 64, 64>}, {pipeline_mode = #tpu.pipeline_mode<synchronous>, transform_indices = @transform_10, window_bounds = array<i64: 1, 64>}, {pipeline_mode = #tpu.pipeline_mode<synchronous>, transform_indices = @transform_11, window_bounds = array<i64: 64, 5>}, {pipeline_mode = #tpu.pipeline_mode<synchronous>, transform_indices = @transform_12, window_bounds = array<i64: 1, 5>}, {transform_indices = @transform_13, window_bounds = array<i64: 2, 5>}]} {
    %c0 = arith.constant 0 : index
    %c0_0 = arith.constant 0 : index
    %0 = vector.load %arg1[%c0, %c0_0] : memref<10x192xf32, #tpu.memory_space<vmem>>, vector<10x192xf32>
    %c0_1 = arith.constant 0 : index
    %c0_2 = arith.constant 0 : index
    %1 = vector.load %arg3[%c0_1, %c0_2] : memref<192x64xbf16, #tpu.memory_space<vmem>>, vector<192x64xbf16>
    %c0_3 = arith.constant 0 : index
    %c0_4 = arith.constant 0 : index
    %2 = vector.load %arg2[%c0_3, %c0_4] : memref<10x64xf32, #tpu.memory_space<vmem>>, vector<10x64xf32>
    %3 = arith.truncf %0 : vector<10x192xf32> to vector<10x192xbf16>
    %cst = arith.constant dense<0.000000e+00> : vector<10x64xf32>
    %4 = tpu.matmul %3, %1, %cst {dimension_numbers = #tpu.dot_dimension_numbers<[1], [0], [0], [1], [0, 0, 1, 1], [], []>} : vector<10x192xbf16>, vector<192x64xbf16>, vector<10x64xf32> -> vector<10x64xf32>
    %5 = arith.addf %4, %2 : vector<10x64xf32>
    %cst_5 = arith.constant dense<0.000000e+00> : vector<10xf32>
    %6 = vector.multi_reduction <add>, %5, %cst_5 [1] : vector<10x64xf32> to vector<10xf32>
    %7 = vector.shape_cast %6 : vector<10xf32> to vector<10x1xf32>
    %cst_6 = arith.constant 6.400000e+01 : f32
    %8 = vector.broadcast %cst_6 : f32 to vector<10x1xf32>
    %9 = arith.divf %7, %8 : vector<10x1xf32>
    %10 = vector.broadcast %9 : vector<10x1xf32> to vector<10x64xf32>
    %11 = arith.subf %5, %10 : vector<10x64xf32>
    %12 = arith.mulf %11, %11 : vector<10x64xf32>
    %cst_7 = arith.constant dense<0.000000e+00> : vector<10xf32>
    %13 = vector.multi_reduction <add>, %12, %cst_7 [1] : vector<10x64xf32> to vector<10xf32>
    %14 = vector.shape_cast %13 : vector<10xf32> to vector<10x1xf32>
    %cst_8 = arith.constant 6.400000e+01 : f32
    %15 = vector.broadcast %cst_8 : f32 to vector<10x1xf32>
    %16 = arith.divf %14, %15 : vector<10x1xf32>
    %cst_9 = arith.constant 9.99999974E-6 : f32
    %17 = vector.broadcast %cst_9 : f32 to vector<10x1xf32>
    %18 = arith.addf %16, %17 : vector<10x1xf32>
    %19 = math.rsqrt %18 : vector<10x1xf32>
    %20 = vector.broadcast %19 : vector<10x1xf32> to vector<10x64xf32>
    %21 = arith.mulf %11, %20 : vector<10x64xf32>
    %c0_10 = arith.constant 0 : index
    %c0_11 = arith.constant 0 : index
    %c0_12 = arith.constant 0 : index
    %22 = vector.load %arg4[%c0_10, %c0_11, %c0_12] : memref<2x1x64xf32, #tpu.memory_space<vmem>>, vector<1x1x64xf32>
    %23 = vector.shape_cast %22 : vector<1x1x64xf32> to vector<1x64xf32>
    %24 = vector.broadcast %23 : vector<1x64xf32> to vector<10x64xf32>
    %25 = arith.mulf %21, %24 : vector<10x64xf32>
    %c1 = arith.constant 1 : index
    %c0_13 = arith.constant 0 : index
    %c0_14 = arith.constant 0 : index
    %26 = vector.load %arg4[%c1, %c0_13, %c0_14] : memref<2x1x64xf32, #tpu.memory_space<vmem>>, vector<1x1x64xf32>
    %27 = vector.shape_cast %26 : vector<1x1x64xf32> to vector<1x64xf32>
    %28 = vector.broadcast %27 : vector<1x64xf32> to vector<10x64xf32>
    %29 = arith.addf %25, %28 : vector<10x64xf32>
    %cst_15 = arith.constant dense<0.000000e+00> : vector<10xf32>
    %30 = vector.multi_reduction <add>, %29, %cst_15 [1] : vector<10x64xf32> to vector<10xf32>
    %31 = vector.shape_cast %30 : vector<10xf32> to vector<10x1xf32>
    %cst_16 = arith.constant 6.400000e+01 : f32
    %32 = vector.broadcast %cst_16 : f32 to vector<10x1xf32>
    %33 = arith.divf %31, %32 : vector<10x1xf32>
    %34 = vector.broadcast %33 : vector<10x1xf32> to vector<10x64xf32>
    %35 = arith.subf %29, %34 : vector<10x64xf32>
    %36 = arith.mulf %35, %35 : vector<10x64xf32>
    %cst_17 = arith.constant dense<0.000000e+00> : vector<10xf32>
    %37 = vector.multi_reduction <add>, %36, %cst_17 [1] : vector<10x64xf32> to vector<10xf32>
    %38 = vector.shape_cast %37 : vector<10xf32> to vector<10x1xf32>
    %cst_18 = arith.constant 6.400000e+01 : f32
    %39 = vector.broadcast %cst_18 : f32 to vector<10x1xf32>
    %40 = arith.divf %38, %39 : vector<10x1xf32>
    %cst_19 = arith.constant 9.99999974E-6 : f32
    %41 = vector.broadcast %cst_19 : f32 to vector<10x1xf32>
    %42 = arith.addf %40, %41 : vector<10x1xf32>
    %43 = math.rsqrt %42 : vector<10x1xf32>
    %44 = vector.broadcast %43 : vector<10x1xf32> to vector<10x64xf32>
    %45 = arith.mulf %35, %44 : vector<10x64xf32>
    %c0_20 = arith.constant 0 : index
    %c0_21 = arith.constant 0 : index
    %c0_22 = arith.constant 0 : index
    %46 = vector.load %arg5[%c0_20, %c0_21, %c0_22] : memref<8x64x64xbf16, #tpu.memory_space<vmem>>, vector<1x64x64xbf16>
    %47 = vector.shape_cast %46 : vector<1x64x64xbf16> to vector<64x64xbf16>
    %c0_23 = arith.constant 0 : index
    %c0_24 = arith.constant 0 : index
    %c0_25 = arith.constant 0 : index
    %48 = vector.load %arg8[%c0_23, %c0_24, %c0_25] : memref<10x1x64xf32, #tpu.memory_space<vmem>>, vector<1x1x64xf32>
    %49 = vector.shape_cast %48 : vector<1x1x64xf32> to vector<1x64xf32>
    %50 = arith.truncf %45 : vector<10x64xf32> to vector<10x64xbf16>
    %cst_26 = arith.constant dense<0.000000e+00> : vector<10x64xf32>
    %51 = tpu.matmul %50, %47, %cst_26 {dimension_numbers = #tpu.dot_dimension_numbers<[1], [0], [0], [1], [0, 0, 1, 1], [], []>} : vector<10x64xbf16>, vector<64x64xbf16>, vector<10x64xf32> -> vector<10x64xf32>
    %52 = vector.broadcast %49 : vector<1x64xf32> to vector<10x64xf32>
    %53 = arith.addf %51, %52 : vector<10x64xf32>
    %c1_27 = arith.constant 1 : index
    %c0_28 = arith.constant 0 : index
    %c0_29 = arith.constant 0 : index
    %54 = vector.load %arg5[%c1_27, %c0_28, %c0_29] : memref<8x64x64xbf16, #tpu.memory_space<vmem>>, vector<1x64x64xbf16>
    %55 = vector.shape_cast %54 : vector<1x64x64xbf16> to vector<64x64xbf16>
    %c1_30 = arith.constant 1 : index
    %c0_31 = arith.constant 0 : index
    %c0_32 = arith.constant 0 : index
    %56 = vector.load %arg8[%c1_30, %c0_31, %c0_32] : memref<10x1x64xf32, #tpu.memory_space<vmem>>, vector<1x1x64xf32>
    %57 = vector.shape_cast %56 : vector<1x1x64xf32> to vector<1x64xf32>
    %58 = arith.truncf %45 : vector<10x64xf32> to vector<10x64xbf16>
    %cst_33 = arith.constant dense<0.000000e+00> : vector<10x64xf32>
    %59 = tpu.matmul %58, %55, %cst_33 {dimension_numbers = #tpu.dot_dimension_numbers<[1], [0], [0], [1], [0, 0, 1, 1], [], []>} : vector<10x64xbf16>, vector<64x64xbf16>, vector<10x64xf32> -> vector<10x64xf32>
    %60 = vector.broadcast %57 : vector<1x64xf32> to vector<10x64xf32>
    %61 = arith.addf %59, %60 : vector<10x64xf32>
    %c2 = arith.constant 2 : index
    %c0_34 = arith.constant 0 : index
    %c0_35 = arith.constant 0 : index
    %62 = vector.load %arg5[%c2, %c0_34, %c0_35] : memref<8x64x64xbf16, #tpu.memory_space<vmem>>, vector<1x64x64xbf16>
    %63 = vector.shape_cast %62 : vector<1x64x64xbf16> to vector<64x64xbf16>
    %c2_36 = arith.constant 2 : index
    %c0_37 = arith.constant 0 : index
    %c0_38 = arith.constant 0 : index
    %64 = vector.load %arg8[%c2_36, %c0_37, %c0_38] : memref<10x1x64xf32, #tpu.memory_space<vmem>>, vector<1x1x64xf32>
    %65 = vector.shape_cast %64 : vector<1x1x64xf32> to vector<1x64xf32>
    %66 = arith.truncf %45 : vector<10x64xf32> to vector<10x64xbf16>
    %cst_39 = arith.constant dense<0.000000e+00> : vector<10x64xf32>
    %67 = tpu.matmul %66, %63, %cst_39 {dimension_numbers = #tpu.dot_dimension_numbers<[1], [0], [0], [1], [0, 0, 1, 1], [], []>} : vector<10x64xbf16>, vector<64x64xbf16>, vector<10x64xf32> -> vector<10x64xf32>
    %68 = vector.broadcast %65 : vector<1x64xf32> to vector<10x64xf32>
    %69 = arith.addf %67, %68 : vector<10x64xf32>
    %70 = vector.shape_cast %53 : vector<10x64xf32> to vector<2x5x64xf32>
    %71 = arith.truncf %70 : vector<2x5x64xf32> to vector<2x5x64xbf16>
    %72 = vector.shape_cast %61 : vector<10x64xf32> to vector<2x5x64xf32>
    %73 = arith.truncf %72 : vector<2x5x64xf32> to vector<2x5x64xbf16>
    %74 = vector.shape_cast %69 : vector<10x64xf32> to vector<2x5x64xf32>
    %75 = arith.truncf %74 : vector<2x5x64xf32> to vector<2x5x64xbf16>
    "tpu.trace_start"() <{level = 10 : i32, message = "bqd,bkd->bqk"}> : () -> ()
    %cst_40 = arith.constant dense<0.000000e+00> : vector<2x5x5xf32>
    %76 = tpu.matmul %71, %73, %cst_40 {dimension_numbers = #tpu.dot_dimension_numbers<[2], [2], [1], [1], [0, 0, 0, 1, 1, 1], [0], [0]>} : vector<2x5x64xbf16>, vector<2x5x64xbf16>, vector<2x5x5xf32> -> vector<2x5x5xf32>
    "tpu.trace_stop"() : () -> ()
    %cst_41 = arith.constant dense<0xFF800000> : vector<2x5xf32>
    %77 = vector.multi_reduction <maximumf>, %76, %cst_41 [2] : vector<2x5x5xf32> to vector<2x5xf32>
    %78 = vector.shape_cast %77 : vector<2x5xf32> to vector<2x5x1xf32>
    %79 = vector.broadcast %78 : vector<2x5x1xf32> to vector<2x5x5xf32>
    %80 = arith.subf %76, %79 : vector<2x5x5xf32>
    %81 = math.exp %80 : vector<2x5x5xf32>
    %cst_42 = arith.constant dense<0.000000e+00> : vector<2x5xf32>
    %82 = vector.multi_reduction <add>, %81, %cst_42 [2] : vector<2x5x5xf32> to vector<2x5xf32>
    %83 = vector.shape_cast %82 : vector<2x5xf32> to vector<2x5x1xf32>
    %84 = arith.truncf %81 : vector<2x5x5xf32> to vector<2x5x5xbf16>
    "tpu.trace_start"() <{level = 10 : i32, message = "bqk,bkd->bqd"}> : () -> ()
    %cst_43 = arith.constant dense<0.000000e+00> : vector<2x5x64xf32>
    %85 = tpu.matmul %84, %75, %cst_43 {dimension_numbers = #tpu.dot_dimension_numbers<[2], [1], [1], [2], [0, 0, 0, 1, 1, 2], [0], [0]>} : vector<2x5x5xbf16>, vector<2x5x64xbf16>, vector<2x5x64xf32> -> vector<2x5x64xf32>
    "tpu.trace_stop"() : () -> ()
    %86 = tpu.reciprocal %83 {approx = true} : vector<2x5x1xf32> -> vector<2x5x1xf32>
    %87 = vector.broadcast %86 : vector<2x5x1xf32> to vector<2x5x64xf32>
    %88 = arith.mulf %85, %87 : vector<2x5x64xf32>
    %89 = vector.shape_cast %88 : vector<2x5x64xf32> to vector<10x64xf32>
    %c3 = arith.constant 3 : index
    %c0_44 = arith.constant 0 : index
    %c0_45 = arith.constant 0 : index
    %90 = vector.load %arg5[%c3, %c0_44, %c0_45] : memref<8x64x64xbf16, #tpu.memory_space<vmem>>, vector<1x64x64xbf16>
    %91 = vector.shape_cast %90 : vector<1x64x64xbf16> to vector<64x64xbf16>
    %c3_46 = arith.constant 3 : index
    %c0_47 = arith.constant 0 : index
    %c0_48 = arith.constant 0 : index
    %92 = vector.load %arg8[%c3_46, %c0_47, %c0_48] : memref<10x1x64xf32, #tpu.memory_space<vmem>>, vector<1x1x64xf32>
    %93 = vector.shape_cast %92 : vector<1x1x64xf32> to vector<1x64xf32>
    %94 = arith.truncf %89 : vector<10x64xf32> to vector<10x64xbf16>
    %cst_49 = arith.constant dense<0.000000e+00> : vector<10x64xf32>
    %95 = tpu.matmul %94, %91, %cst_49 {dimension_numbers = #tpu.dot_dimension_numbers<[1], [0], [0], [1], [0, 0, 1, 1], [], []>} : vector<10x64xbf16>, vector<64x64xbf16>, vector<10x64xf32> -> vector<10x64xf32>
    %96 = vector.broadcast %93 : vector<1x64xf32> to vector<10x64xf32>
    %97 = arith.addf %95, %96 : vector<10x64xf32>
    %98 = arith.addf %29, %97 : vector<10x64xf32>
    %cst_50 = arith.constant dense<0.000000e+00> : vector<10xf32>
    %99 = vector.multi_reduction <add>, %98, %cst_50 [1] : vector<10x64xf32> to vector<10xf32>
    %100 = vector.shape_cast %99 : vector<10xf32> to vector<10x1xf32>
    %cst_51 = arith.constant 6.400000e+01 : f32
    %101 = vector.broadcast %cst_51 : f32 to vector<10x1xf32>
    %102 = arith.divf %100, %101 : vector<10x1xf32>
    %103 = vector.broadcast %102 : vector<10x1xf32> to vector<10x64xf32>
    %104 = arith.subf %98, %103 : vector<10x64xf32>
    %105 = arith.mulf %104, %104 : vector<10x64xf32>
    %cst_52 = arith.constant dense<0.000000e+00> : vector<10xf32>
    %106 = vector.multi_reduction <add>, %105, %cst_52 [1] : vector<10x64xf32> to vector<10xf32>
    %107 = vector.shape_cast %106 : vector<10xf32> to vector<10x1xf32>
    %cst_53 = arith.constant 6.400000e+01 : f32
    %108 = vector.broadcast %cst_53 : f32 to vector<10x1xf32>
    %109 = arith.divf %107, %108 : vector<10x1xf32>
    %cst_54 = arith.constant 9.99999974E-6 : f32
    %110 = vector.broadcast %cst_54 : f32 to vector<10x1xf32>
    %111 = arith.addf %109, %110 : vector<10x1xf32>
    %112 = math.rsqrt %111 : vector<10x1xf32>
    %113 = vector.broadcast %112 : vector<10x1xf32> to vector<10x64xf32>
    %114 = arith.mulf %104, %113 : vector<10x64xf32>
    %c0_55 = arith.constant 0 : index
    %c0_56 = arith.constant 0 : index
    %c0_57 = arith.constant 0 : index
    %115 = vector.load %arg6[%c0_55, %c0_56, %c0_57] : memref<2x64x256xbf16, #tpu.memory_space<vmem>>, vector<1x64x256xbf16>
    %116 = vector.shape_cast %115 : vector<1x64x256xbf16> to vector<64x256xbf16>
    %c0_58 = arith.constant 0 : index
    %c0_59 = arith.constant 0 : index
    %c0_60 = arith.constant 0 : index
    %117 = vector.load %arg9[%c0_58, %c0_59, %c0_60] : memref<2x1x256xf32, #tpu.memory_space<vmem>>, vector<1x1x256xf32>
    %118 = vector.shape_cast %117 : vector<1x1x256xf32> to vector<1x256xf32>
    %119 = arith.truncf %114 : vector<10x64xf32> to vector<10x64xbf16>
    %cst_61 = arith.constant dense<0.000000e+00> : vector<10x256xf32>
    %120 = tpu.matmul %119, %116, %cst_61 {dimension_numbers = #tpu.dot_dimension_numbers<[1], [0], [0], [1], [0, 0, 1, 1], [], []>} : vector<10x64xbf16>, vector<64x256xbf16>, vector<10x256xf32> -> vector<10x256xf32>
    %121 = vector.broadcast %118 : vector<1x256xf32> to vector<10x256xf32>
    %122 = arith.addf %120, %121 : vector<10x256xf32>
    %cst_62 = arith.constant 1.702000e+00 : f32
    %123 = vector.broadcast %cst_62 : f32 to vector<10x256xf32>
    %124 = arith.mulf %123, %122 : vector<10x256xf32>
    %125 = arith.negf %124 : vector<10x256xf32>
    %126 = math.exp %125 : vector<10x256xf32>
    %cst_63 = arith.constant 1.000000e+00 : f32
    %127 = vector.broadcast %cst_63 : f32 to vector<10x256xf32>
    %128 = arith.addf %127, %126 : vector<10x256xf32>
    %129 = arith.divf %127, %128 : vector<10x256xf32>
    %130 = arith.mulf %122, %129 : vector<10x256xf32>
    %c0_64 = arith.constant 0 : index
    %c0_65 = arith.constant 0 : index
    %c0_66 = arith.constant 0 : index
    %131 = vector.load %arg7[%c0_64, %c0_65, %c0_66] : memref<2x256x64xbf16, #tpu.memory_space<vmem>>, vector<1x256x64xbf16>
    %132 = vector.shape_cast %131 : vector<1x256x64xbf16> to vector<256x64xbf16>
    %c4 = arith.constant 4 : index
    %c0_67 = arith.constant 0 : index
    %c0_68 = arith.constant 0 : index
    %133 = vector.load %arg8[%c4, %c0_67, %c0_68] : memref<10x1x64xf32, #tpu.memory_space<vmem>>, vector<1x1x64xf32>
    %134 = vector.shape_cast %133 : vector<1x1x64xf32> to vector<1x64xf32>
    %135 = arith.truncf %130 : vector<10x256xf32> to vector<10x256xbf16>
    %cst_69 = arith.constant dense<0.000000e+00> : vector<10x64xf32>
    %136 = tpu.matmul %135, %132, %cst_69 {dimension_numbers = #tpu.dot_dimension_numbers<[1], [0], [0], [1], [0, 0, 1, 1], [], []>} : vector<10x256xbf16>, vector<256x64xbf16>, vector<10x64xf32> -> vector<10x64xf32>
    %137 = vector.broadcast %134 : vector<1x64xf32> to vector<10x64xf32>
    %138 = arith.addf %136, %137 : vector<10x64xf32>
    %139 = arith.addf %98, %138 : vector<10x64xf32>
    %cst_70 = arith.constant dense<0.000000e+00> : vector<10xf32>
    %140 = vector.multi_reduction <add>, %139, %cst_70 [1] : vector<10x64xf32> to vector<10xf32>
    %141 = vector.shape_cast %140 : vector<10xf32> to vector<10x1xf32>
    %cst_71 = arith.constant 6.400000e+01 : f32
    %142 = vector.broadcast %cst_71 : f32 to vector<10x1xf32>
    %143 = arith.divf %141, %142 : vector<10x1xf32>
    %144 = vector.broadcast %143 : vector<10x1xf32> to vector<10x64xf32>
    %145 = arith.subf %139, %144 : vector<10x64xf32>
    %146 = arith.mulf %145, %145 : vector<10x64xf32>
    %cst_72 = arith.constant dense<0.000000e+00> : vector<10xf32>
    %147 = vector.multi_reduction <add>, %146, %cst_72 [1] : vector<10x64xf32> to vector<10xf32>
    %148 = vector.shape_cast %147 : vector<10xf32> to vector<10x1xf32>
    %cst_73 = arith.constant 6.400000e+01 : f32
    %149 = vector.broadcast %cst_73 : f32 to vector<10x1xf32>
    %150 = arith.divf %148, %149 : vector<10x1xf32>
    %cst_74 = arith.constant 9.99999974E-6 : f32
    %151 = vector.broadcast %cst_74 : f32 to vector<10x1xf32>
    %152 = arith.addf %150, %151 : vector<10x1xf32>
    %153 = math.rsqrt %152 : vector<10x1xf32>
    %154 = vector.broadcast %153 : vector<10x1xf32> to vector<10x64xf32>
    %155 = arith.mulf %145, %154 : vector<10x64xf32>
    %c4_75 = arith.constant 4 : index
    %c0_76 = arith.constant 0 : index
    %c0_77 = arith.constant 0 : index
    %156 = vector.load %arg5[%c4_75, %c0_76, %c0_77] : memref<8x64x64xbf16, #tpu.memory_space<vmem>>, vector<1x64x64xbf16>
    %157 = vector.shape_cast %156 : vector<1x64x64xbf16> to vector<64x64xbf16>
    %c5 = arith.constant 5 : index
    %c0_78 = arith.constant 0 : index
    %c0_79 = arith.constant 0 : index
    %158 = vector.load %arg8[%c5, %c0_78, %c0_79] : memref<10x1x64xf32, #tpu.memory_space<vmem>>, vector<1x1x64xf32>
    %159 = vector.shape_cast %158 : vector<1x1x64xf32> to vector<1x64xf32>
    %160 = arith.truncf %155 : vector<10x64xf32> to vector<10x64xbf16>
    %cst_80 = arith.constant dense<0.000000e+00> : vector<10x64xf32>
    %161 = tpu.matmul %160, %157, %cst_80 {dimension_numbers = #tpu.dot_dimension_numbers<[1], [0], [0], [1], [0, 0, 1, 1], [], []>} : vector<10x64xbf16>, vector<64x64xbf16>, vector<10x64xf32> -> vector<10x64xf32>
    %162 = vector.broadcast %159 : vector<1x64xf32> to vector<10x64xf32>
    %163 = arith.addf %161, %162 : vector<10x64xf32>
    %c5_81 = arith.constant 5 : index
    %c0_82 = arith.constant 0 : index
    %c0_83 = arith.constant 0 : index
    %164 = vector.load %arg5[%c5_81, %c0_82, %c0_83] : memref<8x64x64xbf16, #tpu.memory_space<vmem>>, vector<1x64x64xbf16>
    %165 = vector.shape_cast %164 : vector<1x64x64xbf16> to vector<64x64xbf16>
    %c6 = arith.constant 6 : index
    %c0_84 = arith.constant 0 : index
    %c0_85 = arith.constant 0 : index
    %166 = vector.load %arg8[%c6, %c0_84, %c0_85] : memref<10x1x64xf32, #tpu.memory_space<vmem>>, vector<1x1x64xf32>
    %167 = vector.shape_cast %166 : vector<1x1x64xf32> to vector<1x64xf32>
    %168 = arith.truncf %155 : vector<10x64xf32> to vector<10x64xbf16>
    %cst_86 = arith.constant dense<0.000000e+00> : vector<10x64xf32>
    %169 = tpu.matmul %168, %165, %cst_86 {dimension_numbers = #tpu.dot_dimension_numbers<[1], [0], [0], [1], [0, 0, 1, 1], [], []>} : vector<10x64xbf16>, vector<64x64xbf16>, vector<10x64xf32> -> vector<10x64xf32>
    %170 = vector.broadcast %167 : vector<1x64xf32> to vector<10x64xf32>
    %171 = arith.addf %169, %170 : vector<10x64xf32>
    %c6_87 = arith.constant 6 : index
    %c0_88 = arith.constant 0 : index
    %c0_89 = arith.constant 0 : index
    %172 = vector.load %arg5[%c6_87, %c0_88, %c0_89] : memref<8x64x64xbf16, #tpu.memory_space<vmem>>, vector<1x64x64xbf16>
    %173 = vector.shape_cast %172 : vector<1x64x64xbf16> to vector<64x64xbf16>
    %c7 = arith.constant 7 : index
    %c0_90 = arith.constant 0 : index
    %c0_91 = arith.constant 0 : index
    %174 = vector.load %arg8[%c7, %c0_90, %c0_91] : memref<10x1x64xf32, #tpu.memory_space<vmem>>, vector<1x1x64xf32>
    %175 = vector.shape_cast %174 : vector<1x1x64xf32> to vector<1x64xf32>
    %176 = arith.truncf %155 : vector<10x64xf32> to vector<10x64xbf16>
    %cst_92 = arith.constant dense<0.000000e+00> : vector<10x64xf32>
    %177 = tpu.matmul %176, %173, %cst_92 {dimension_numbers = #tpu.dot_dimension_numbers<[1], [0], [0], [1], [0, 0, 1, 1], [], []>} : vector<10x64xbf16>, vector<64x64xbf16>, vector<10x64xf32> -> vector<10x64xf32>
    %178 = vector.broadcast %175 : vector<1x64xf32> to vector<10x64xf32>
    %179 = arith.addf %177, %178 : vector<10x64xf32>
    %180 = vector.shape_cast %163 : vector<10x64xf32> to vector<2x5x64xf32>
    %181 = arith.truncf %180 : vector<2x5x64xf32> to vector<2x5x64xbf16>
    %182 = vector.shape_cast %171 : vector<10x64xf32> to vector<2x5x64xf32>
    %183 = arith.truncf %182 : vector<2x5x64xf32> to vector<2x5x64xbf16>
    %184 = vector.shape_cast %179 : vector<10x64xf32> to vector<2x5x64xf32>
    %185 = arith.truncf %184 : vector<2x5x64xf32> to vector<2x5x64xbf16>
    "tpu.trace_start"() <{level = 10 : i32, message = "bqd,bkd->bqk"}> : () -> ()
    %cst_93 = arith.constant dense<0.000000e+00> : vector<2x5x5xf32>
    %186 = tpu.matmul %181, %183, %cst_93 {dimension_numbers = #tpu.dot_dimension_numbers<[2], [2], [1], [1], [0, 0, 0, 1, 1, 1], [0], [0]>} : vector<2x5x64xbf16>, vector<2x5x64xbf16>, vector<2x5x5xf32> -> vector<2x5x5xf32>
    "tpu.trace_stop"() : () -> ()
    %cst_94 = arith.constant dense<0xFF800000> : vector<2x5xf32>
    %187 = vector.multi_reduction <maximumf>, %186, %cst_94 [2] : vector<2x5x5xf32> to vector<2x5xf32>
    %188 = vector.shape_cast %187 : vector<2x5xf32> to vector<2x5x1xf32>
    %189 = vector.broadcast %188 : vector<2x5x1xf32> to vector<2x5x5xf32>
    %190 = arith.subf %186, %189 : vector<2x5x5xf32>
    %191 = math.exp %190 : vector<2x5x5xf32>
    %cst_95 = arith.constant dense<0.000000e+00> : vector<2x5xf32>
    %192 = vector.multi_reduction <add>, %191, %cst_95 [2] : vector<2x5x5xf32> to vector<2x5xf32>
    %193 = vector.shape_cast %192 : vector<2x5xf32> to vector<2x5x1xf32>
    %194 = arith.truncf %191 : vector<2x5x5xf32> to vector<2x5x5xbf16>
    "tpu.trace_start"() <{level = 10 : i32, message = "bqk,bkd->bqd"}> : () -> ()
    %cst_96 = arith.constant dense<0.000000e+00> : vector<2x5x64xf32>
    %195 = tpu.matmul %194, %185, %cst_96 {dimension_numbers = #tpu.dot_dimension_numbers<[2], [1], [1], [2], [0, 0, 0, 1, 1, 2], [0], [0]>} : vector<2x5x5xbf16>, vector<2x5x64xbf16>, vector<2x5x64xf32> -> vector<2x5x64xf32>
    "tpu.trace_stop"() : () -> ()
    %196 = tpu.reciprocal %193 {approx = true} : vector<2x5x1xf32> -> vector<2x5x1xf32>
    %197 = vector.broadcast %196 : vector<2x5x1xf32> to vector<2x5x64xf32>
    %198 = arith.mulf %195, %197 : vector<2x5x64xf32>
    %199 = vector.shape_cast %198 : vector<2x5x64xf32> to vector<10x64xf32>
    %c7_97 = arith.constant 7 : index
    %c0_98 = arith.constant 0 : index
    %c0_99 = arith.constant 0 : index
    %200 = vector.load %arg5[%c7_97, %c0_98, %c0_99] : memref<8x64x64xbf16, #tpu.memory_space<vmem>>, vector<1x64x64xbf16>
    %201 = vector.shape_cast %200 : vector<1x64x64xbf16> to vector<64x64xbf16>
    %c8 = arith.constant 8 : index
    %c0_100 = arith.constant 0 : index
    %c0_101 = arith.constant 0 : index
    %202 = vector.load %arg8[%c8, %c0_100, %c0_101] : memref<10x1x64xf32, #tpu.memory_space<vmem>>, vector<1x1x64xf32>
    %203 = vector.shape_cast %202 : vector<1x1x64xf32> to vector<1x64xf32>
    %204 = arith.truncf %199 : vector<10x64xf32> to vector<10x64xbf16>
    %cst_102 = arith.constant dense<0.000000e+00> : vector<10x64xf32>
    %205 = tpu.matmul %204, %201, %cst_102 {dimension_numbers = #tpu.dot_dimension_numbers<[1], [0], [0], [1], [0, 0, 1, 1], [], []>} : vector<10x64xbf16>, vector<64x64xbf16>, vector<10x64xf32> -> vector<10x64xf32>
    %206 = vector.broadcast %203 : vector<1x64xf32> to vector<10x64xf32>
    %207 = arith.addf %205, %206 : vector<10x64xf32>
    %208 = arith.addf %139, %207 : vector<10x64xf32>
    %cst_103 = arith.constant dense<0.000000e+00> : vector<10xf32>
    %209 = vector.multi_reduction <add>, %208, %cst_103 [1] : vector<10x64xf32> to vector<10xf32>
    %210 = vector.shape_cast %209 : vector<10xf32> to vector<10x1xf32>
    %cst_104 = arith.constant 6.400000e+01 : f32
    %211 = vector.broadcast %cst_104 : f32 to vector<10x1xf32>
    %212 = arith.divf %210, %211 : vector<10x1xf32>
    %213 = vector.broadcast %212 : vector<10x1xf32> to vector<10x64xf32>
    %214 = arith.subf %208, %213 : vector<10x64xf32>
    %215 = arith.mulf %214, %214 : vector<10x64xf32>
    %cst_105 = arith.constant dense<0.000000e+00> : vector<10xf32>
    %216 = vector.multi_reduction <add>, %215, %cst_105 [1] : vector<10x64xf32> to vector<10xf32>
    %217 = vector.shape_cast %216 : vector<10xf32> to vector<10x1xf32>
    %cst_106 = arith.constant 6.400000e+01 : f32
    %218 = vector.broadcast %cst_106 : f32 to vector<10x1xf32>
    %219 = arith.divf %217, %218 : vector<10x1xf32>
    %cst_107 = arith.constant 9.99999974E-6 : f32
    %220 = vector.broadcast %cst_107 : f32 to vector<10x1xf32>
    %221 = arith.addf %219, %220 : vector<10x1xf32>
    %222 = math.rsqrt %221 : vector<10x1xf32>
    %223 = vector.broadcast %222 : vector<10x1xf32> to vector<10x64xf32>
    %224 = arith.mulf %214, %223 : vector<10x64xf32>
    %c1_108 = arith.constant 1 : index
    %c0_109 = arith.constant 0 : index
    %c0_110 = arith.constant 0 : index
    %225 = vector.load %arg6[%c1_108, %c0_109, %c0_110] : memref<2x64x256xbf16, #tpu.memory_space<vmem>>, vector<1x64x256xbf16>
    %226 = vector.shape_cast %225 : vector<1x64x256xbf16> to vector<64x256xbf16>
    %c1_111 = arith.constant 1 : index
    %c0_112 = arith.constant 0 : index
    %c0_113 = arith.constant 0 : index
    %227 = vector.load %arg9[%c1_111, %c0_112, %c0_113] : memref<2x1x256xf32, #tpu.memory_space<vmem>>, vector<1x1x256xf32>
    %228 = vector.shape_cast %227 : vector<1x1x256xf32> to vector<1x256xf32>
    %229 = arith.truncf %224 : vector<10x64xf32> to vector<10x64xbf16>
    %cst_114 = arith.constant dense<0.000000e+00> : vector<10x256xf32>
    %230 = tpu.matmul %229, %226, %cst_114 {dimension_numbers = #tpu.dot_dimension_numbers<[1], [0], [0], [1], [0, 0, 1, 1], [], []>} : vector<10x64xbf16>, vector<64x256xbf16>, vector<10x256xf32> -> vector<10x256xf32>
    %231 = vector.broadcast %228 : vector<1x256xf32> to vector<10x256xf32>
    %232 = arith.addf %230, %231 : vector<10x256xf32>
    %cst_115 = arith.constant 1.702000e+00 : f32
    %233 = vector.broadcast %cst_115 : f32 to vector<10x256xf32>
    %234 = arith.mulf %233, %232 : vector<10x256xf32>
    %235 = arith.negf %234 : vector<10x256xf32>
    %236 = math.exp %235 : vector<10x256xf32>
    %cst_116 = arith.constant 1.000000e+00 : f32
    %237 = vector.broadcast %cst_116 : f32 to vector<10x256xf32>
    %238 = arith.addf %237, %236 : vector<10x256xf32>
    %239 = arith.divf %237, %238 : vector<10x256xf32>
    %240 = arith.mulf %232, %239 : vector<10x256xf32>
    %c1_117 = arith.constant 1 : index
    %c0_118 = arith.constant 0 : index
    %c0_119 = arith.constant 0 : index
    %241 = vector.load %arg7[%c1_117, %c0_118, %c0_119] : memref<2x256x64xbf16, #tpu.memory_space<vmem>>, vector<1x256x64xbf16>
    %242 = vector.shape_cast %241 : vector<1x256x64xbf16> to vector<256x64xbf16>
    %c9 = arith.constant 9 : index
    %c0_120 = arith.constant 0 : index
    %c0_121 = arith.constant 0 : index
    %243 = vector.load %arg8[%c9, %c0_120, %c0_121] : memref<10x1x64xf32, #tpu.memory_space<vmem>>, vector<1x1x64xf32>
    %244 = vector.shape_cast %243 : vector<1x1x64xf32> to vector<1x64xf32>
    %245 = arith.truncf %240 : vector<10x256xf32> to vector<10x256xbf16>
    %cst_122 = arith.constant dense<0.000000e+00> : vector<10x64xf32>
    %246 = tpu.matmul %245, %242, %cst_122 {dimension_numbers = #tpu.dot_dimension_numbers<[1], [0], [0], [1], [0, 0, 1, 1], [], []>} : vector<10x256xbf16>, vector<256x64xbf16>, vector<10x64xf32> -> vector<10x64xf32>
    %247 = vector.broadcast %244 : vector<1x64xf32> to vector<10x64xf32>
    %248 = arith.addf %246, %247 : vector<10x64xf32>
    %249 = arith.addf %208, %248 : vector<10x64xf32>
    %250 = vector.shape_cast %249 : vector<10x64xf32> to vector<2x5x64xf32>
    %251 = vector.extract_strided_slice %250 {offsets = [0, 0, 0], sizes = [2, 1, 64], strides = [1, 1, 1]} : vector<2x5x64xf32> to vector<2x1x64xf32>
    %252 = vector.shape_cast %251 : vector<2x1x64xf32> to vector<2x64xf32>
    %cst_123 = arith.constant dense<0.000000e+00> : vector<2xf32>
    %253 = vector.multi_reduction <add>, %252, %cst_123 [1] : vector<2x64xf32> to vector<2xf32>
    %254 = vector.shape_cast %253 : vector<2xf32> to vector<2x1xf32>
    %cst_124 = arith.constant 6.400000e+01 : f32
    %255 = vector.broadcast %cst_124 : f32 to vector<2x1xf32>
    %256 = arith.divf %254, %255 : vector<2x1xf32>
    %257 = vector.broadcast %256 : vector<2x1xf32> to vector<2x64xf32>
    %258 = arith.subf %252, %257 : vector<2x64xf32>
    %259 = arith.mulf %258, %258 : vector<2x64xf32>
    %cst_125 = arith.constant dense<0.000000e+00> : vector<2xf32>
    %260 = vector.multi_reduction <add>, %259, %cst_125 [1] : vector<2x64xf32> to vector<2xf32>
    %261 = vector.shape_cast %260 : vector<2xf32> to vector<2x1xf32>
    %cst_126 = arith.constant 6.400000e+01 : f32
    %262 = vector.broadcast %cst_126 : f32 to vector<2x1xf32>
    %263 = arith.divf %261, %262 : vector<2x1xf32>
    %cst_127 = arith.constant 9.99999974E-6 : f32
    %264 = vector.broadcast %cst_127 : f32 to vector<2x1xf32>
    %265 = arith.addf %263, %264 : vector<2x1xf32>
    %266 = math.rsqrt %265 : vector<2x1xf32>
    %267 = vector.broadcast %266 : vector<2x1xf32> to vector<2x64xf32>
    %268 = arith.mulf %258, %267 : vector<2x64xf32>
    %c0_128 = arith.constant 0 : index
    %c0_129 = arith.constant 0 : index
    %269 = vector.load %arg10[%c0_128, %c0_129] : memref<64x64xbf16, #tpu.memory_space<vmem>>, vector<64x64xbf16>
    %c0_130 = arith.constant 0 : index
    %c0_131 = arith.constant 0 : index
    %270 = vector.load %arg11[%c0_130, %c0_131] : memref<1x64xf32, #tpu.memory_space<vmem>>, vector<1x64xf32>
    %271 = arith.truncf %268 : vector<2x64xf32> to vector<2x64xbf16>
    %cst_132 = arith.constant dense<0.000000e+00> : vector<2x64xf32>
    %272 = tpu.matmul %271, %269, %cst_132 {dimension_numbers = #tpu.dot_dimension_numbers<[1], [0], [0], [1], [0, 0, 1, 1], [], []>} : vector<2x64xbf16>, vector<64x64xbf16>, vector<2x64xf32> -> vector<2x64xf32>
    %273 = vector.broadcast %270 : vector<1x64xf32> to vector<2x64xf32>
    %274 = arith.addf %272, %273 : vector<2x64xf32>
    %cst_133 = arith.constant 0.000000e+00 : f32
    %275 = vector.broadcast %cst_133 : f32 to vector<2x64xf32>
    %276 = arith.maximumf %274, %275 : vector<2x64xf32>
    %c0_134 = arith.constant 0 : index
    %c0_135 = arith.constant 0 : index
    %277 = vector.load %arg12[%c0_134, %c0_135] : memref<64x5xbf16, #tpu.memory_space<vmem>>, vector<64x5xbf16>
    %c0_136 = arith.constant 0 : index
    %c0_137 = arith.constant 0 : index
    %278 = vector.load %arg13[%c0_136, %c0_137] : memref<1x5xf32, #tpu.memory_space<vmem>>, vector<1x5xf32>
    %279 = arith.truncf %276 : vector<2x64xf32> to vector<2x64xbf16>
    %cst_138 = arith.constant dense<0.000000e+00> : vector<2x5xf32>
    %280 = tpu.matmul %279, %277, %cst_138 {dimension_numbers = #tpu.dot_dimension_numbers<[1], [0], [0], [1], [0, 0, 1, 1], [], []>} : vector<2x64xbf16>, vector<64x5xbf16>, vector<2x5xf32> -> vector<2x5xf32>
    %281 = vector.broadcast %278 : vector<1x5xf32> to vector<2x5xf32>
    %282 = arith.addf %280, %281 : vector<2x5xf32>
    %c0_139 = arith.constant 0 : index
    %c0_140 = arith.constant 0 : index
    %283 = vector.load %arg14[%c0_139, %c0_140] : memref<2x5xf32, #tpu.memory_space<vmem>>, vector<2x5xf32>
    tpu.vector_store %arg14[%c0_139, %c0_140], %282 {strides = array<i32>} : memref<2x5xf32, #tpu.memory_space<vmem>>, vector<2x5xf32>,
    return
  }
  func.func @transform_0(%arg0: i32) -> (i32, i32) {
    %c0_i32 = arith.constant 0 : i32
    %c0_i32_0 = arith.constant 0 : i32
    return %arg0, %c0_i32 : i32, i32
  }
  func.func @transform_1(%arg0: i32) -> (i32, i32) {
    %c0_i32 = arith.constant 0 : i32
    %c0_i32_0 = arith.constant 0 : i32
    %c0_i32_1 = arith.constant 0 : i32
    return %c0_i32, %c0_i32_0 : i32, i32
  }
  func.func @transform_2(%arg0: i32) -> (i32, i32) {
    %c0_i32 = arith.constant 0 : i32
    %c0_i32_0 = arith.constant 0 : i32
    %c0_i32_1 = arith.constant 0 : i32
    return %c0_i32, %c0_i32_0 : i32, i32
  }
  func.func @transform_3(%arg0: i32) -> (i32, i32, i32) {
    %c0_i32 = arith.constant 0 : i32
    %c0_i32_0 = arith.constant 0 : i32
    %c0_i32_1 = arith.constant 0 : i32
    %c0_i32_2 = arith.constant 0 : i32
    return %c0_i32, %c0_i32_0, %c0_i32_1 : i32, i32, i32
  }
  func.func @transform_4(%arg0: i32) -> (i32, i32, i32) {
    %c0_i32 = arith.constant 0 : i32
    %c0_i32_0 = arith.constant 0 : i32
    %c0_i32_1 = arith.constant 0 : i32
    %c0_i32_2 = arith.constant 0 : i32
    return %c0_i32, %c0_i32_0, %c0_i32_1 : i32, i32, i32
  }
  func.func @transform_5(%arg0: i32) -> (i32, i32, i32) {
    %c0_i32 = arith.constant 0 : i32
    %c0_i32_0 = arith.constant 0 : i32
    %c0_i32_1 = arith.constant 0 : i32
    %c0_i32_2 = arith.constant 0 : i32
    return %c0_i32, %c0_i32_0, %c0_i32_1 : i32, i32, i32
  }
  func.func @transform_6(%arg0: i32) -> (i32, i32, i32) {
    %c0_i32 = arith.constant 0 : i32
    %c0_i32_0 = arith.constant 0 : i32
    %c0_i32_1 = arith.constant 0 : i32
    %c0_i32_2 = arith.constant 0 : i32
    return %c0_i32, %c0_i32_0, %c0_i32_1 : i32, i32, i32
  }
  func.func @transform_7(%arg0: i32) -> (i32, i32, i32) {
    %c0_i32 = arith.constant 0 : i32
    %c0_i32_0 = arith.constant 0 : i32
    %c0_i32_1 = arith.constant 0 : i32
    %c0_i32_2 = arith.constant 0 : i32
    return %c0_i32, %c0_i32_0, %c0_i32_1 : i32, i32, i32
  }
  func.func @transform_8(%arg0: i32) -> (i32, i32, i32) {
    %c0_i32 = arith.constant 0 : i32
    %c0_i32_0 = arith.constant 0 : i32
    %c0_i32_1 = arith.constant 0 : i32
    %c0_i32_2 = arith.constant 0 : i32
    return %c0_i32, %c0_i32_0, %c0_i32_1 : i32, i32, i32
  }
  func.func @transform_9(%arg0: i32) -> (i32, i32) {
    %c0_i32 = arith.constant 0 : i32
    %c0_i32_0 = arith.constant 0 : i32
    %c0_i32_1 = arith.constant 0 : i32
    return %c0_i32, %c0_i32_0 : i32, i32
  }
  func.func @transform_10(%arg0: i32) -> (i32, i32) {
    %c0_i32 = arith.constant 0 : i32
    %c0_i32_0 = arith.constant 0 : i32
    %c0_i32_1 = arith.constant 0 : i32
    return %c0_i32, %c0_i32_0 : i32, i32
  }
  func.func @transform_11(%arg0: i32) -> (i32, i32) {
    %c0_i32 = arith.constant 0 : i32
    %c0_i32_0 = arith.constant 0 : i32
    %c0_i32_1 = arith.constant 0 : i32
    return %c0_i32, %c0_i32_0 : i32, i32
  }
  func.func @transform_12(%arg0: i32) -> (i32, i32) {
    %c0_i32 = arith.constant 0 : i32
    %c0_i32_0 = arith.constant 0 : i32
    %c0_i32_1 = arith.constant 0 : i32
    return %c0_i32, %c0_i32_0 : i32, i32
  }
  func.func @transform_13(%arg0: i32) -> (i32, i32) {
    %c0_i32 = arith.constant 0 : i32
    %c0_i32_0 = arith.constant 0 : i32
    return %arg0, %c0_i32 : i32, i32
  }
}

</mosaic_0001>

<bundles_post_ra>
// kernel: tile.9
= control target key start
LH: loop header
LB: loop body
LE: loop exit
PB: predicated region body
PF: predicated region fallthrough
CT: control target
= control target key end

     0   :  { %vm3_vm0 = vcmask 523264   ;;  %s34_s0 = inlined_call_operand.vmem [shape: f32[2,5,64], index: 0, kind: input, shape index: {}]   ;;  %s35_s1 = inlined_call_operand.vmem [shape: f32[10,64], index: 1, kind: output, shape index: {}]  }
   0x1   :  { %v2_v0 = vld [vmem:[%s34_s0] sm:$0x1f]   ;;  %v10_v1 = vld [vmem:[%s34_s0 + $0x8] sm:$0x1f]  }
   0x2   :  { %4 = vst.msk [vmem:[%s35_s1] sm:$0x1f] %vm3_vm0, %v2_v0   ;;  %11 = vst.msk [vmem:[%s35_s1 + $0x5] sm:$0x1f] %vm3_vm0, %v10_v1  }

// kernel: clip_classifier_forward.1
= control target key start
LH: loop header
LB: loop body
LE: loop exit
PB: predicated region body
PF: predicated region fallthrough
CT: control target
= control target key end

     0   :  { %v4310_v0 = vmov 0   ;;  %vm149_vm0 = vcmask 523264   ;;  %vm197_vm1 = vcmask 517120   ;;  %vm4312_vm2 = vmmov 0   ;;  %s5140_s2 = inlined_call_operand.vmem [shape: bf16[192,64], index: 2, kind: input, shape index: {}]   ;;  %s5141_s0 = inlined_call_operand.vmem [shape: f32[10,192], index: 0, kind: input, shape index: {}]   ;;  %s5142_s1 = inlined_call_operand.vmem [shape: f32[10,64], index: 1, kind: input, shape index: {}]   ;;  %s5143_s3 = inlined_call_operand.vmem [shape: f32[2,1,64], index: 3, kind: input, shape index: {}]   ;;  %s5144_s4 = inlined_call_operand.vmem [shape: bf16[8,64,64], index: 4, kind: input, shape index: {}]   ;;  %s5145_s7 = inlined_call_operand.vmem [shape: f32[10,1,64], index: 7, kind: input, shape index: {}]   ;;  %s5146_s5 = inlined_call_operand.vmem [shape: bf16[2,64,256], index: 5, kind: input, shape index: {}]   ;;  %s5147_s6 = inlined_call_operand.vmem [shape: bf16[2,256,64], index: 6, kind: input, shape index: {}]   ;;  %s5148_s8 = inlined_call_operand.vmem [shape: f32[2,1,256], index: 8, kind: input, shape index: {}]   ;;  %s5149_s9 = inlined_call_operand.vmem [shape: bf16[64,64], index: 9, kind: input, shape index: {}]   ;;  %s5150_s11 = inlined_call_operand.vmem [shape: bf16[64,5], index: 11, kind: input, shape index: {}]   ;;  %s5151_s10 = inlined_call_operand.vmem [shape: f32[1,64], index: 10, kind: input, shape index: {}]   ;;  %s5152_s12 = inlined_call_operand.vmem [shape: f32[1,5], index: 12, kind: input, shape index: {}]   ;;  %s5153_s13 = inlined_call_operand.vmem [shape: f32[2,5], index: 13, kind: output, shape index: {}]  }
   0x1   :  { %153 = vmatprep.subr.bf16.mxu0 %v4310_v0  ;;  %v4132_v1 = vld [vmem:[%s5140_s2] sm:$0xff]   ;;  %v4133_v2 = vld [vmem:[%s5140_s2 + $0x8] sm:$0xff]   ;;  %v4134_v3 = vld [vmem:[%s5140_s2 + $0x10] sm:$0xff]   ;;  %vm1097_vm3 = vcmask 1041408   ;;  %vm1098_vm4 = vcmask 1042432   ;;  %vm1072_vm5 = vcmask 36864  }
   0x2   :  { %154 = vmatpush1.bf16.msra.mxu0 %v4132_v1  ;;  %v4135_v4 = vld [vmem:[%s5140_s2 + $0x18] sm:$0xff]   ;;  %v46_v5 = vld [vmem:[%s5141_s0 + $0x8] sm:$0xff]  ;;  %v4136_v8 = vld [vmem:[%s5140_s2 + $0x20] sm:$0xff]   ;;  %vm1093_vm6 = vcmask 39936   ;;  %vm3431_vm7 = vcmask 1041409   ;;  %vm3585_vm8 = vcmask 33792  }
   0x3   :  { %155 = vmatprep.subr.bf16.mxu0 %v4310_v0  ;;  %v48_v6 = vld [vmem:[%s5141_s0 + $0x18] sm:$0x3]  ;;  %v4137_v9 = vld [vmem:[%s5140_s2 + $0x28] sm:$0xff]   ;;  %v4138_v10 = vld [vmem:[%s5140_s2 + $0x30] sm:$0xff]  }
   0x4   :  { %v76_v7 = vpack.c.bf16 %v48_v6, %v46_v5  ;;  %v4139_v11 = vld [vmem:[%s5140_s2 + $0x38] sm:$0xff]   ;;  %v4140_v12 = vld [vmem:[%s5140_s2 + $0x40] sm:$0xff]   ;;  %v4141_v13 = vld [vmem:[%s5140_s2 + $0x48] sm:$0xff]   ;;  %v4311_v5 = vmov 0.0  }
   0x5   :  { %v4142_v14 = vld [vmem:[%s5140_s2 + $0x50] sm:$0xff]   ;;  %v4143_v15 = vld [vmem:[%s5140_s2 + $0x58] sm:$0xff]   ;;  %v45_v16 = vld [vmem:[%s5141_s0] sm:$0xff]  ;;  %3959 = vmatprep.subr.bf16.mxu1 %v4311_v5  ;;  %3967 = vmatprep.mubr.msk.bf16.mxu1 %vm4312_vm2, %v4311_v5 }
   0x6   :  { %156 = vmatpush1.bf16.msra.mxu0 %v4133_v2  ;;  %3603 = vmatprep.mubr.msk.bf16.mxu0 %vm149_vm0, %v76_v7  ;;  %v47_v17 = vld [vmem:[%s5141_s0 + $0x10] sm:$0x3]  ;;  %v73_v19 = vld [vmem:[%s5142_s1] sm:$0xff]  ;;  %v74_v21 = vld [vmem:[%s5142_s1 + $0x8] sm:$0x3] }
   0x7   :  { %157 = vmatprep.subr.bf16.mxu0 %v4310_v0  ;;  %v75_v18 = vpack.c.bf16 %v47_v17, %v45_v16  ;;  %v3604_v46 = vld [vmem:[%s5143_s3] ss:$0 sm:$0xff]  ;;  %v3606_v48 = vld [vmem:[%s5143_s3 + $0x1] ss:$0 sm:$0xff]  ;;  %v4145_v6 = vld [vmem:[%s5144_s4 + $0x8] sm:$0xff]  }
   0x8   :  { %v4146_v7 = vld [vmem:[%s5144_s4 + $0x10] sm:$0xff]  }
   0xa   :  { %158 = vmatpush1.bf16.msra.mxu0 %v4134_v3 }
   0xb   :  { %159 = vmatprep.subr.bf16.mxu0 %v4310_v0 }
   0xe   :  { %160 = vmatpush1.bf16.msra.mxu0 %v4135_v4  ;;  %v4144_v4 = vld [vmem:[%s5144_s4] sm:$0xff]  }
   0xf   :  { %161 = vmatprep.subr.bf16.mxu0 %v4310_v0  ;;  %3960 = vmatpush3.bf16.msra.mxu1 %v4144_v4 }
  0x10   :  { %3961 = vmatprep.subr.bf16.mxu1 %v4311_v5 }
  0x12   :  { %162 = vmatpush1.bf16.msra.mxu0 %v4136_v8  ;;  %v4147_v8 = vld [vmem:[%s5144_s4 + $0x18] sm:$0xff]  }
  0x13   :  { %163 = vmatprep.subr.bf16.mxu0 %v4310_v0  ;;  %3962 = vmatpush3.bf16.msra.mxu1 %v4145_v6 }
  0x14   :  { %3963 = vmatprep.subr.bf16.mxu1 %v4311_v5 }
  0x16   :  { %164 = vmatpush1.bf16.msra.mxu0 %v4137_v9 }
  0x17   :  { %165 = vmatprep.subr.bf16.mxu0 %v4310_v0  ;;  %3964 = vmatpush3.bf16.msra.mxu1 %v4146_v7 }
  0x18   :  { %3965 = vmatprep.subr.bf16.mxu1 %v4311_v5 }
  0x1a   :  { %166 = vmatpush1.bf16.msra.mxu0 %v4138_v10 }
  0x1b   :  { %167 = vmatprep.subr.bf16.mxu0 %v4310_v0  ;;  %3966 = vmatpush3.bf16.msra.mxu1 %v4147_v8 }
  0x1c   :  { %3971 = vmatprep.subr.bf16.mxu1 %v4311_v5 }
  0x1e   :  { %168 = vmatpush1.bf16.msra.mxu0 %v4139_v11 }
  0x1f   :  { %169 = vmatprep.subr.bf16.mxu0 %v4310_v0 }
  0x22   :  { %170 = vmatpush1.bf16.msra.mxu0 %v4140_v12 }
  0x23   :  { %171 = vmatprep.subr.bf16.mxu0 %v4310_v0 }
  0x26   :  { %172 = vmatpush1.bf16.msra.mxu0 %v4141_v13 }
  0x27   :  { %173 = vmatprep.subr.bf16.mxu0 %v4310_v0 }
  0x2a   :  { %174 = vmatpush1.bf16.msra.mxu0 %v4142_v14 }
  0x2b   :  { %175 = vmatprep.subr.bf16.mxu0 %v4310_v0 }
  0x2e   :  { %176 = vmatpush1.bf16.msra.mxu0 %v4143_v15 }
  0x2f   :  { %3995 = vmatprep.subr.bf16.mxu0 %v4311_v5 }
  0x31   :  { %186 = vmatmul.mubr.bf16.vlgmr.msra.gmra.mrb[0].mxu0 %v75_v18 }
  0x32   :  { %3997 = vmatprep.mubr.msk.bf16.mxu0 %vm4312_vm2, %v4311_v5 }
 0x104   :  { %v187_v20 = vpop.f32.mrb[0].mxu0 }
 0x105   :  { %v188_v22 = vadd.f32 %v187_v20, %v73_v19  ;;  %v189_v23 = vpop.f32.mrb[1].mxu0  ;;  %v4148_v19 = vld [vmem:[%s5144_s4 + $0x20] sm:$0xff]  }
 0x106   :  { %v190_v24 = vpop.f32.mrb[2].mxu0  ;;  %v4151_v23 = vld [vmem:[%s5144_s4 + $0x38] sm:$0xff]  }
 0x107   :  { %v191_v25 = vadd.f32 %v190_v24, %v74_v21  ;;  %v192_v26 = vpop.f32.mrb[3].mxu0  ;;  %v194_v27 = vsel %vm149_vm0, %v188_v22, 0.0  ;;  %v4149_v21 = vld [vmem:[%s5144_s4 + $0x28] sm:$0xff]   ;;  %v4152_v24 = vld [vmem:[%s5144_s4 + $0x40] sm:$0xff]  }
 0x108   :  { %195 = vadd.xlane.f32.xlu0 %v194_v27  ;;  %v4154_v26 = vld [vmem:[%s5144_s4 + $0x50] sm:$0xff]   ;;  %v4155_v27 = vld [vmem:[%s5144_s4 + $0x58] sm:$0xff]  }
 0x109   :  { %v198_v28 = vsel %vm197_vm1, %v191_v25, 0.0 }
 0x10c   :  { %199 = vadd.xlane.f32.xlu0 %v198_v28  ;;  %v4313_v28 = vmov 1966171168  }
 0x195   :  { %v196_v29 = vpop.xlane.xlu0 %195 }
 0x196   :  { %v202_v30 = vmul.f32 0.015625, %v196_v29  ;;  %v519_v29 = vunpack.c.l.s4 %v4313_v28 }
 0x198   :  { %v204_v31 = vsub.f32 %v188_v22, %v202_v30  ;;  %v4150_v22 = vld [vmem:[%s5144_s4 + $0x30] sm:$0xff]   ;;  %v521_v30 = vlaneseq }
 0x199   :  { %v200_v32 = vpop.xlane.xlu0 %199 }
 0x19a   :  { %v203_v33 = vmul.f32 0.015625, %v200_v32  ;;  %v206_v34 = vmul.f32 %v204_v31, %v204_v31  ;;  %v520_v32 = vunpack.c.0.s8 %v519_v29 }
 0x19c   :  { %v205_v35 = vsub.f32 %v191_v25, %v203_v33  ;;  %v208_v36 = vsel %vm149_vm0, %v206_v34, 0.0  ;;  %v4153_v25 = vld [vmem:[%s5144_s4 + $0x48] sm:$0xff]   ;;  %v4540_v33 = vshrl.u32 %v521_v30, 7 }
 0x19d   :  { %209 = vadd.xlane.f32.xlu1 %v208_v36 }
 0x19e   :  { %v207_v37 = vmul.f32 %v205_v35, %v205_v35 }
 0x1a0   :  { %v211_v38 = vsel %vm197_vm1, %v207_v37, 0.0 }
 0x1a1   :  { %212 = vadd.xlane.f32.xlu1 %v211_v38 }
 0x22a   :  { %v210_v39 = vpop.xlane.xlu1 %209 }
 0x22b   :  { %v214_v40 = vmul.f32 0.015625, %v210_v39  ;;  %v4543_v39 = vsub.s32 %v520_v32, %v4540_v33 }
 0x22d   :  { %v216_v41 = vadd.f32 1e-05, %v214_v40 }
 0x22e   :  { %v213_v42 = vpop.xlane.xlu1 %212 }
 0x22f   :  { %4240 = vrsqrt.f32 %v216_v41  ;;  %v215_v43 = vmul.f32 0.015625, %v213_v42 }
 0x231   :  { %v217_v44 = vadd.f32 1e-05, %v215_v43 }
 0x233   :  { %4242 = vrsqrt.f32 %v217_v44 }
 0x239   :  { %v4241_v45 = vpop.eup %4240 }
 0x23a   :  { %v220_v47 = vmul.f32 %v4241_v45, %v204_v31  ;;  %v3607_v31 = vld [vmem:[%s5145_s7] ss:$0 sm:$0xff] }
 0x23c   :  { %v229_v49 = vmul.f32 %v3604_v46, %v220_v47 }
 0x23d   :  { %v4243_v50 = vpop.eup %4242 }
 0x23e   :  { %v4462_v51 = vadd.f32 %v3606_v48, %v229_v49  ;;  %v221_v52 = vmul.f32 %v4243_v50, %v205_v35 }
 0x240   :  { %v241_v53 = vsel %vm149_vm0, %v4462_v51, 0.0  ;;  %v230_v54 = vmul.f32 %v3604_v46, %v221_v52 }
 0x241   :  { %242 = vadd.xlane.f32.xlu0 %v241_v53 }
 0x242   :  { %v4466_v55 = vadd.f32 %v3606_v48, %v230_v54 }
 0x244   :  { %v244_v56 = vsel %vm197_vm1, %v4466_v55, 0.0 }
 0x245   :  { %245 = vadd.xlane.f32.xlu1 %v244_v56 }
 0x2ce   :  { %v243_v57 = vpop.xlane.xlu0 %242 }
 0x2cf   :  { %v247_v58 = vmul.f32 0.015625, %v243_v57  ;;  %v3622_v57 = vld [vmem:[%s5145_s7 + $0x1] ss:$0 sm:$0xff] }
 0x2d1   :  { %v249_v59 = vsub.f32 %v4462_v51, %v247_v58 }
 0x2d2   :  { %v246_v60 = vpop.xlane.xlu1 %245 }
 0x2d3   :  { %v248_v61 = vmul.f32 0.015625, %v246_v60  ;;  %v251_v62 = vmul.f32 %v249_v59, %v249_v59 }
 0x2d5   :  { %v250_v63 = vsub.f32 %v4466_v55, %v248_v61  ;;  %v253_v1 = vsel %vm149_vm0, %v251_v62, 0.0 }
 0x2d6   :  { %254 = vadd.xlane.f32.xlu0 %v253_v1 }
 0x2d7   :  { %v252_v2 = vmul.f32 %v250_v63, %v250_v63 }
 0x2d9   :  { %v256_v3 = vsel %vm197_vm1, %v252_v2, 0.0 }
 0x2da   :  { %257 = vadd.xlane.f32.xlu1 %v256_v3 }
 0x363   :  { %v255_v9 = vpop.xlane.xlu0 %254 }
 0x364   :  { %v259_v10 = vmul.f32 0.015625, %v255_v9 }
 0x366   :  { %v261_v11 = vadd.f32 1e-05, %v259_v10 }
 0x367   :  { %v258_v12 = vpop.xlane.xlu1 %257 }
 0x368   :  { %v260_v13 = vmul.f32 0.015625, %v258_v12  ;;  %4244 = vrsqrt.f32 %v261_v11 }
 0x36a   :  { %v262_v14 = vadd.f32 1e-05, %v260_v13 }
 0x36c   :  { %4246 = vrsqrt.f32 %v262_v14 }
 0x372   :  { %v4245_v15 = vpop.eup %4244 }
 0x373   :  { %v265_v17 = vmul.f32 %v4245_v15, %v249_v59 }
 0x376   :  { %v4247_v16 = vpop.eup %4246 }
 0x377   :  { %v266_v18 = vmul.f32 %v4247_v16, %v250_v63 }
 0x379   :  { %v276_v20 = vpack.c.bf16 %v266_v18, %v265_v17 }
 0x37b   :  { %3968 = vmatmul.mubr.msk.bf16.vlgmr.msra.gmra.mrb[0].mxu1 %vm149_vm0, %v276_v20 }
 0x37c   :  { %3972 = vmatpush3.bf16.msra.mxu1 %v4148_v19  ;;  %3979 = vmatprep.mubr.msk.bf16.mxu1 %vm4312_vm2, %v4311_v5 }
 0x37d   :  { %3973 = vmatprep.subr.bf16.mxu1 %v4311_v5 }
 0x380   :  { %3974 = vmatpush3.bf16.msra.mxu1 %v4149_v21 }
 0x381   :  { %3975 = vmatprep.subr.bf16.mxu1 %v4311_v5 }
 0x384   :  { %3976 = vmatpush3.bf16.msra.mxu1 %v4150_v22 }
 0x385   :  { %3977 = vmatprep.subr.bf16.mxu1 %v4311_v5 }
 0x388   :  { %3978 = vmatpush3.bf16.msra.mxu1 %v4151_v23 }
 0x389   :  { %3983 = vmatprep.subr.bf16.mxu1 %v4311_v5 }
 0x38b   :  { %3980 = vmatmul.mubr.msk.bf16.vlgmr.msra.gmra.mrb[4].mxu1 %vm149_vm0, %v276_v20 }
 0x38c   :  { %3984 = vmatpush3.bf16.msra.mxu1 %v4152_v24  ;;  %3991 = vmatprep.mubr.msk.bf16.mxu1 %vm4312_vm2, %v4311_v5 }
 0x38d   :  { %3985 = vmatprep.subr.bf16.mxu1 %v4311_v5 }
 0x390   :  { %3986 = vmatpush3.bf16.msra.mxu1 %v4153_v25 }
 0x391   :  { %3987 = vmatprep.subr.bf16.mxu1 %v4311_v5 }
 0x394   :  { %3988 = vmatpush3.bf16.msra.mxu1 %v4154_v26 }
 0x395   :  { %3989 = vmatprep.subr.bf16.mxu1 %v4311_v5 }
 0x398   :  { %3990 = vmatpush3.bf16.msra.mxu1 %v4155_v27 }
 0x399   :  { %4001 = vmatprep.subr.bf16.mxu1 %v4311_v5 }
 0x39b   :  { %3992 = vmatmul.mubr.msk.bf16.vlgmr.msra.gmra.mrb[8].mxu1 %vm149_vm0, %v276_v20 }
 0x39c   :  { %4003 = vmatprep.mubr.msk.bf16.mxu1 %vm4312_vm2, %v4311_v5 }
 0x44e   :  { %v344_v34 = vpop.f32.mrb[0].mxu1 }
 0x44f   :  { %v345_v35 = vadd.f32 %v3607_v31, %v344_v34  ;;  %v3969_v36 = vpop.f32.mrb[1].mxu1 }
 0x450   :  { %v347_v37 = vpop.f32.mrb[2].mxu1 }
 0x451   :  { %v517_v38 = vcombine.high %v345_v35, %v345_v35  ;;  %v348_v40 = vadd.f32 %v3607_v31, %v347_v37  ;;  %v3970_v41 = vpop.f32.mrb[3].mxu1  ;;  %v524_v53 = vrot.slane %v345_v35, %v4543_v39 }
 0x452   :  { %v3637_v41 = vld [vmem:[%s5145_s7 + $0x2] ss:$0 sm:$0xff] }
 0x453   :  { %v531_v42 = vrot.slane %v517_v38, %v4543_v39  ;;  %v572_v43 = vrot.slane %v348_v40, %v4543_v39  ;;  %v532_v60 = vcombine.high %v524_v53, %v524_v53  ;;  %v540_v15 = vrot.slane %v524_v53, %v4543_v39 }
 0x455   :  { %v533_v44 = vcombine.high %v531_v42, %v531_v42  ;;  %v4548_v45 = vrot.slane %v531_v42, %v4543_v39  ;;  %v573_v46 = vcombine.high %v572_v43, %v572_v43  ;;  %v580_v52 = vrot.slane %v572_v43, %v4543_v39 }
 0x456   :  { %v554_v10 = vrot.slane %v532_v60, %v4543_v39 }
 0x457   :  { %v561_v47 = vrot.slane %v533_v44, %v4543_v39  ;;  %v563_v48 = vcombine.high %v4548_v45, %v4548_v45  ;;  %v587_v54 = vrot.slane %v573_v46, %v4543_v39 }
 0x458   :  { %v588_v21 = vcombine.low %v540_v15, %v554_v10  ;;  %v3643_v22 = vcombine.high %v540_v15, %v554_v10 }
 0x459   :  { %v627_v49 = vcombine.low %v561_v47, %v563_v48  ;;  %v565_v50 = vcombine.high %v561_v47, %v561_v47  ;;  %v649_v61 = vrot.slane %v587_v54, %v4543_v39 }
 0x45a   :  { %v596_v35 = vrot.slane %v588_v21, %v4543_v39  ;;  %v603_v36 = vrot.slane %v3643_v22, %v4543_v39 }
 0x45b   :  { %v628_v56 = vcombine.low %v565_v50, %v580_v52  ;;  %v635_v58 = vrot.slane %v627_v49, %v4543_v39  ;;  %v664_v11 = vrot.slane %v649_v61, %v4543_v39 }
 0x45c   :  { %v611_v47 = vcombine.low %v596_v35, %v603_v36 }
 0x45d   :  { %v642_v59 = vrot.slane %v628_v56, %v4543_v39  ;;  %v610_v56 = vrot.slane %v4548_v45, %v4543_v39 }
 0x45e   :  { %v426_v62 = vpop.f32.mrb[4].mxu1 }
 0x45f   :  { %v650_v63 = vcombine.low %v635_v58, %v642_v59  ;;  %v427_v1 = vadd.f32 %v3622_v57, %v426_v62  ;;  %v3981_v2 = vpop.f32.mrb[5].mxu1  ;;  %v625_v45 = vrot.slane %v610_v56, %v4543_v39 }
 0x460   :  { %v429_v3 = vpop.f32.mrb[6].mxu1 }
 0x461   :  { %v657_v4 = vrot.slane %v650_v63, %v4543_v39  ;;  %v672_v6 = vcombine.high %v427_v1, %v427_v1  ;;  %v679_v7 = vrot.slane %v427_v1, %v4543_v39  ;;  %v430_v8 = vadd.f32 %v3622_v57, %v429_v3  ;;  %v3982_v9 = vpop.f32.mrb[7].mxu1 }
 0x462   :  { %v618_v63 = vrot.slane %v611_v47, %v4543_v39 }
 0x463   :  { %v686_v12 = vrot.slane %v672_v6, %v4543_v39  ;;  %v687_v13 = vcombine.high %v679_v7, %v679_v7  ;;  %v727_v14 = vrot.slane %v430_v8, %v4543_v39  ;;  %v4569_v16 = vcombine.low %v657_v4, %v664_v11 }
 0x464   :  { %v695_v18 = vrot.slane %v679_v7, %v4543_v39  ;;  %v626_v15 = vcombine.low %v618_v63, %v625_v45 }
 0x465   :  { %v688_v17 = vcombine.high %v686_v12, %v686_v12  ;;  %v702_v19 = vrot.slane %v686_v12, %v4543_v39  ;;  %v709_v20 = vrot.slane %v687_v13, %v4543_v39  ;;  %v728_v23 = vcombine.high %v727_v14, %v727_v14 }
 0x466   :  { %v735_v29 = vrot.slane %v727_v14, %v4543_v39 }
 0x467   :  { %v716_v24 = vrot.slane %v688_v17, %v4543_v39  ;;  %v718_v25 = vcombine.high %v702_v19, %v702_v19  ;;  %v743_v26 = vcombine.low %v695_v18, %v709_v20  ;;  %v3644_v27 = vcombine.high %v695_v18, %v709_v20 }
 0x468   :  { %v765_v28 = vrot.slane %v702_v19, %v4543_v39  ;;  %v742_v37 = vrot.slane %v728_v23, %v4543_v39 }
 0x469   :  { %v751_v30 = vrot.slane %v743_v26, %v4543_v39  ;;  %v758_v31 = vrot.slane %v3644_v27, %v4543_v39  ;;  %v782_v32 = vcombine.low %v716_v24, %v718_v25  ;;  %v720_v34 = vcombine.high %v716_v24, %v716_v24 }
 0x46a   :  { %v780_v44 = vrot.slane %v765_v28, %v4543_v39  ;;  %v804_v48 = vrot.slane %v742_v37, %v4543_v39 }
 0x46b   :  { %v783_v38 = vcombine.low %v720_v34, %v735_v29  ;;  %v766_v40 = vcombine.low %v751_v30, %v758_v31  ;;  %v790_v46 = vrot.slane %v782_v32, %v4543_v39  ;;  %v668_v29 = vpack.c.bf16 %v626_v15, %v626_v15  ;;  %v4158_v15 = vld [vmem:[%s5144_s4 + $0x70] sm:$0xff]  }
 0x46c   :  { %v819_v2 = vrot.slane %v804_v48, %v4543_v39  ;;  %v4314_v34 = vmov 65535  }
 0x46d   :  { %v797_v42 = vrot.slane %v783_v38, %v4543_v39  ;;  %v773_v43 = vrot.slane %v766_v40, %v4543_v39  ;;  %v1099_v35 = vsel %vm1097_vm3, 4294967295, %v4314_v34 }
 0x46e   :  { %v508_v49 = vpop.f32.mrb[8].mxu1 }
 0x46f   :  { %v509_v50 = vadd.f32 %v3637_v41, %v508_v49  ;;  %v3993_v52 = vpop.f32.mrb[9].mxu1  ;;  %v781_v53 = vcombine.low %v773_v43, %v780_v44  ;;  %v805_v54 = vcombine.low %v790_v46, %v797_v42  ;;  %v4624_v44 = vsel %vm1098_vm4, %v1099_v35, 0 }
 0x470   :  { %v511_v57 = vpop.f32.mrb[10].mxu1 }
 0x471   :  { %v827_v58 = vcombine.high %v509_v50, %v509_v50  ;;  %v834_v59 = vrot.slane %v509_v50, %v4543_v39  ;;  %v512_v60 = vadd.f32 %v3637_v41, %v511_v57  ;;  %v3994_v61 = vpop.f32.mrb[11].mxu1  ;;  %v823_v62 = vpack.c.bf16 %v781_v53, %v781_v53 }
 0x472   :  { %v812_v1 = vrot.slane %v805_v54, %v4543_v39  ;;  %v669_v41 = vpack.c.bf16 %v4569_v16, %v4569_v16 }
 0x473   :  { %v841_v3 = vrot.slane %v827_v58, %v4543_v39  ;;  %v842_v4 = vcombine.high %v834_v59, %v834_v59  ;;  %v882_v6 = vrot.slane %v512_v60, %v4543_v39  ;;  %v850_v7 = vrot.slane %v834_v59, %v4543_v39 }
 0x474   :  { %v984_v8 = vsel %vm149_vm0, %v823_v62, 0  ;;  %v820_v9 = vcombine.low %v812_v1, %v819_v2 }
 0x475   :  { %v843_v10 = vcombine.high %v841_v3, %v841_v3  ;;  %v857_v11 = vrot.slane %v841_v3, %v4543_v39  ;;  %v864_v12 = vrot.slane %v842_v4, %v4543_v39  ;;  %v883_v13 = vcombine.high %v882_v6, %v882_v6  ;;  %3996 = vmatpush3.bf16.xpose.msra.mxu0 %v984_v8 }
 0x476   :  { %v824_v14 = vpack.c.bf16 %v820_v9, %v820_v9  ;;  %4007 = vmatprep.subr.bf16.mxu0 %v4311_v5  ;;  %v890_v22 = vrot.slane %v882_v6, %v4543_v39 }
 0x477   :  { %v871_v17 = vrot.slane %v843_v10, %v4543_v39  ;;  %v873_v18 = vcombine.high %v857_v11, %v857_v11  ;;  %v898_v19 = vcombine.low %v850_v7, %v864_v12  ;;  %v3645_v20 = vcombine.high %v850_v7, %v864_v12 }
 0x478   :  { %v920_v21 = vrot.slane %v857_v11, %v4543_v39  ;;  %v897_v23 = vrot.slane %v883_v13, %v4543_v39  ;;  %v1030_v24 = vsel %vm149_vm0, %v824_v14, 0  ;;  %v4156_v13 = vld [vmem:[%s5144_s4 + $0x60] sm:$0xff]   ;;  %v4157_v14 = vld [vmem:[%s5144_s4 + $0x68] sm:$0xff]  }
 0x479   :  { %v906_v25 = vrot.slane %v898_v19, %v4543_v39  ;;  %v913_v26 = vrot.slane %v3645_v20, %v4543_v39  ;;  %v937_v27 = vcombine.low %v871_v17, %v873_v18  ;;  %v875_v28 = vcombine.high %v871_v17, %v871_v17  ;;  %4002 = vmatpush3.bf16.xpose.msra.mxu1 %v1030_v24  ;;  %v4159_v17 = vld [vmem:[%s5144_s4 + $0x78] sm:$0xff]  }
 0x47a   :  { %4013 = vmatprep.subr.bf16.mxu1 %v4311_v5  ;;  %v935_v32 = vrot.slane %v920_v21, %v4543_v39  ;;  %v959_v38 = vrot.slane %v897_v23, %v4543_v39 }
 0x47b   :  { %v921_v30 = vcombine.low %v906_v25, %v913_v26  ;;  %v938_v31 = vcombine.low %v875_v28, %v890_v22  ;;  %v945_v36 = vrot.slane %v937_v27, %v4543_v39 }
 0x47c   :  { %3998 = vmatmul.mubr.msk.bf16.vlgmr.msra.gmra.mrb[4].mxu0 %vm149_vm0, %v668_v29  ;;  %v974_v46 = vrot.slane %v959_v38, %v4543_v39 }
 0x47d   :  { %v952_v37 = vrot.slane %v938_v31, %v4543_v39  ;;  %v928_v40 = vrot.slane %v921_v30, %v4543_v39  ;;  %4009 = vmatprep.mubr.msk.bf16.mxu0 %vm4312_vm2, %v4311_v5 }
 0x47f   :  { %v960_v42 = vcombine.low %v945_v36, %v952_v37  ;;  %v936_v43 = vcombine.low %v928_v40, %v935_v32 }
 0x480   :  { %4004 = vmatmul.mubr.msk.bf16.vlgmr.msra.gmra.mrb[12].mxu1 %vm149_vm0, %v669_v41 }
 0x481   :  { %v978_v47 = vpack.c.bf16 %v936_v43, %v936_v43  ;;  %v967_v48 = vrot.slane %v960_v42, %v4543_v39  ;;  %4015 = vmatprep.mubr.msk.bf16.mxu1 %vm4312_vm2, %v4311_v5 }
 0x483   :  { %v1102_v49 = vand.u32 %v4624_v44, %v978_v47  ;;  %v975_v50 = vcombine.low %v967_v48, %v974_v46 }
 0x485   :  { %4008 = vmatpush3.bf16.msra.mxu0 %v1102_v49  ;;  %v979_v52 = vpack.c.bf16 %v975_v50, %v975_v50 }
 0x486   :  { %4019 = vmatprep.subr.bf16.mxu0 %v4311_v5 }
 0x487   :  { %v1148_v16 = vand.u32 %v4624_v44, %v979_v52 }
 0x489   :  { %4014 = vmatpush3.bf16.msra.mxu1 %v1148_v16 }
 0x54f   :  { %v1020_v53 = vpop.f32.mrb[4].mxu0 }
 0x550   :  { %v3999_v54 = vpop.f32.mrb[5].mxu0  ;;  %v1073_v56 = vsel %vm1072_vm5, %v1020_v53, -inf }
 0x551   :  { %1074 = vmax.xlane.f32.xlu0 %v1073_v56  ;;  %v1023_v57 = vpop.f32.mrb[6].mxu0 }
 0x552   :  { %v4000_v58 = vpop.f32.mrb[7].mxu0 }
 0x553   :  { %v1066_v59 = vpop.f32.mrb[12].mxu1 }
 0x554   :  { %v4005_v60 = vpop.f32.mrb[13].mxu1  ;;  %v1076_v61 = vsel %vm1072_vm5, %v1066_v59, -inf }
 0x555   :  { %1077 = vmax.xlane.f32.xlu1 %v1076_v61  ;;  %v1069_v62 = vpop.f32.mrb[14].mxu1 }
 0x556   :  { %v4006_v63 = vpop.f32.mrb[15].mxu1 }
 0x5de   :  { %v1075_v1 = vpop.xlane.xlu0 %1074 }
 0x5df   :  { %v1079_v2 = vsub.f32 %v1020_v53, %v1075_v1 }
 0x5e1   :  { %v1081_v3 = vmul.f32 1.442695, %v1079_v2 }
 0x5e2   :  { %v1078_v4 = vpop.xlane.xlu1 %1077 }
 0x5e3   :  { %4248 = vpow2.f32 %v1081_v3  ;;  %v1080_v6 = vsub.f32 %v1066_v59, %v1078_v4 }
 0x5e5   :  { %v1083_v45 = vmul.f32 1.442695, %v1080_v6 }
 0x5e7   :  { %4250 = vpow2.f32 %v1083_v45 }
 0x5ed   :  { %v4249_v7 = vpop.eup %4248 }
 0x5ee   :  { %v1085_v8 = vsel %vm1072_vm5, %v4249_v7, 0.0  ;;  %v1091_v9 = vpack.c.bf16 %v4249_v7, %v4249_v7  ;;  %v3660_v7 = vld [vmem:[%s5145_s7 + $0x3] ss:$0 sm:$0xff] }
 0x5ef   :  { %1086 = vadd.xlane.f32.xlu0 %v1085_v8 }
 0x5f0   :  { %4010 = vmatmul.mubr.msk.bf16.vlgmr.msra.gmra.mrb[8].mxu0 %vm1093_vm6, %v1091_v9 }
 0x5f1   :  { %v4251_v10 = vpop.eup %4250  ;;  %4027 = vmatprep.mubr.msk.bf16.mxu0 %vm4312_vm2, %v4311_v5  ;;  %4020 = vmatpush3.bf16.msra.mxu0 %v4156_v13 }
 0x5f2   :  { %v1088_v11 = vsel %vm1072_vm5, %v4251_v10, 0.0  ;;  %v1092_v12 = vpack.c.bf16 %v4251_v10, %v4251_v10  ;;  %4021 = vmatprep.subr.bf16.mxu0 %v4311_v5 }
 0x5f3   :  { %1089 = vadd.xlane.f32.xlu1 %v1088_v11 }
 0x5f4   :  { %4016 = vmatmul.mubr.msk.bf16.vlgmr.msra.gmra.mrb[16].mxu1 %vm1093_vm6, %v1092_v12 }
 0x5f5   :  { %1550 = vmatprep.mubr.bf16.mxu1 %v4310_v0  ;;  %4022 = vmatpush3.bf16.msra.mxu0 %v4157_v14 }
 0x5f6   :  { %4023 = vmatprep.subr.bf16.mxu0 %v4311_v5 }
 0x5f9   :  { %4024 = vmatpush3.bf16.msra.mxu0 %v4158_v15 }
 0x5fa   :  { %4025 = vmatprep.subr.bf16.mxu0 %v4311_v5 }
 0x5fd   :  { %4026 = vmatpush3.bf16.msra.mxu0 %v4159_v17 }
 0x67c   :  { %v1087_v18 = vpop.xlane.xlu0 %1086 }
 0x67d   :  { %4252 = vrcp.f32 %v1087_v18 }
 0x680   :  { %v1090_v19 = vpop.xlane.xlu1 %1089 }
 0x681   :  { %4254 = vrcp.f32 %v1090_v19 }
 0x687   :  { %v4253_v20 = vpop.eup %4252 }
 0x68b   :  { %v4255_v28 = vpop.eup %4254 }
 0x6c3   :  { %v1138_v21 = vpop.f32.mrb[8].mxu0 }
 0x6c4   :  { %v1192_v22 = vmul.f32 %v4253_v20, %v1138_v21  ;;  %v4011_v23 = vpop.f32.mrb[9].mxu0 }
 0x6c5   :  { %v1141_v24 = vpop.f32.mrb[10].mxu0 }
 0x6c6   :  { %v1196_v25 = vcombine.high %v1192_v22, %v1192_v22  ;;  %v1203_v26 = vrot.slane %v1192_v22, %v4543_v39  ;;  %v4012_v27 = vpop.f32.mrb[11].mxu0 }
 0x6c7   :  { %v1184_v29 = vpop.f32.mrb[16].mxu1  ;;  %v4162_v27 = vld [vmem:[%s5146_s5 + $0x4] ss:$8 sps:$4 sm:$0xff]  }
 0x6c8   :  { %v1211_v30 = vcombine.high %v1203_v26, %v1203_v26  ;;  %v1193_v31 = vmul.f32 %v4255_v28, %v1184_v29  ;;  %v4017_v32 = vpop.f32.mrb[17].mxu1  ;;  %v1210_v34 = vrot.slane %v1196_v25, %v4543_v39  ;;  %v1218_v36 = vrot.slane %v1203_v26, %v4543_v39  ;;  %v4160_v28 = vld [vmem:[%s5146_s5] ss:$8 sps:$4 sm:$0xff]   ;;  %1518 = vmatprep.subr.bf16.mxu1 %v4162_v27  ;;  %v4165_v29 = vld [vmem:[%s5146_s5 + $0x14] ss:$8 sps:$4 sm:$0xff]  }
 0x6c9   :  { %v1187_v35 = vpop.f32.mrb[18].mxu1  ;;  %1519 = vmatpush1.bf16.msra.mxu1 %v4160_v28  ;;  %v4166_v32 = vld [vmem:[%s5146_s5 + $0x20] ss:$8 sps:$4 sm:$0xff]  }
 0x6ca   :  { %v1232_v37 = vrot.slane %v1211_v30, %v4543_v39  ;;  %v1235_v38 = vcombine.high %v1193_v31, %v1193_v31  ;;  %v1242_v40 = vrot.slane %v1193_v31, %v4543_v39  ;;  %v4018_v41 = vpop.f32.mrb[19].mxu1  ;;  %v1225_v48 = vrot.slane %v1210_v34, %v4543_v39  ;;  %v4163_v30 = vld [vmem:[%s5146_s5 + $0x10] ss:$8 sps:$4 sm:$0xff]   ;;  %1520 = vmatprep.subr.bf16.mxu1 %v4165_v29  ;;  %v4168_v31 = vld [vmem:[%s5146_s5 + $0x24] ss:$8 sps:$4 sm:$0xff]  }
 0x6cb   :  { %v4171_v34 = vld [vmem:[%s5146_s5 + $0x34] ss:$8 sps:$4 sm:$0xff]   ;;  %v4169_v35 = vld [vmem:[%s5146_s5 + $0x30] ss:$8 sps:$4 sm:$0xff]  }
 0x6cc   :  { %v1285_v42 = vcombine.low %v1218_v36, %v1232_v37  ;;  %v3659_v43 = vcombine.high %v1218_v36, %v1232_v37  ;;  %v1249_v46 = vrot.slane %v1235_v38, %v4543_v39  ;;  %v1250_v47 = vcombine.high %v1242_v40, %v1242_v40 }
 0x6cd   :  { %v1257_v49 = vrot.slane %v1242_v40, %v4543_v39  ;;  %1521 = vmatpush1.bf16.msra.mxu1 %v4163_v30 }
 0x6ce   :  { %v1271_v50 = vrot.slane %v1250_v47, %v4543_v39  ;;  %v1295_v52 = vrot.slane %v1285_v42, %v4543_v39  ;;  %v1302_v16 = vrot.slane %v3659_v43, %v4543_v39  ;;  %v1264_v56 = vrot.slane %v1249_v46, %v4543_v39  ;;  %1522 = vmatprep.subr.bf16.mxu1 %v4168_v31 }
 0x6cf   :  { %v1272_v53 = vcombine.high %v1257_v49, %v1257_v49  ;;  %v1287_v54 = vcombine.low %v1225_v48, %v1257_v49 }
 0x6d0   :  { %v1273_v57 = vcombine.high %v1271_v50, %v1271_v50  ;;  %v1317_v60 = vcombine.low %v1295_v52, %v1302_v16  ;;  %v4173_v52 = vld [vmem:[%s5147_s6] sm:$0xff]   ;;  %v4174_v16 = vld [vmem:[%s5147_s6 + $0x48] sm:$0xff]  }
 0x6d1   :  { %v1288_v58 = vcombine.low %v1271_v50, %v1272_v53  ;;  %v1309_v61 = vrot.slane %v1287_v54, %v4543_v39  ;;  %1523 = vmatpush1.bf16.msra.mxu1 %v4166_v32  ;;  %v4172_v50 = vld [vmem:[%s5147_s6 + $0x40] sm:$0xff]   ;;  %v4175_v53 = vld [vmem:[%s5147_s6 + $0x8] sm:$0xff]   ;;  %v4176_v54 = vld [vmem:[%s5147_s6 + $0x50] sm:$0xff]  }
 0x6d2   :  { %v1334_v59 = vcombine.low %v1273_v57, %v1264_v56  ;;  %v1325_v2 = vrot.slane %v1317_v60, %v4543_v39  ;;  %1524 = vmatprep.subr.bf16.mxu1 %v4171_v34  ;;  %3877 = vmatprep.subr.bf16.mxu0 %v4172_v50  ;;  %v4177_v56 = vld [vmem:[%s5147_s6 + $0x10] sm:$0xff]   ;;  %v4178_v57 = vld [vmem:[%s5147_s6 + $0x58] sm:$0xff]   ;;  %v4181_v60 = vld [vmem:[%s5147_s6 + $0x20] sm:$0xff]  }
 0x6d3   :  { %v1316_v62 = vrot.slane %v1288_v58, %v4543_v39  ;;  %v4179_v58 = vld [vmem:[%s5147_s6 + $0x18] sm:$0xff]  }
 0x6d4   :  { %v1341_v1 = vrot.slane %v1334_v59, %v4543_v39  ;;  %v4180_v59 = vld [vmem:[%s5147_s6 + $0x60] sm:$0xff]  }
 0x6d5   :  { %v1318_v63 = vcombine.low %v1309_v61, %v1316_v62  ;;  %1525 = vmatpush1.bf16.msra.mxu1 %v4169_v35  ;;  %v4182_v61 = vld [vmem:[%s5147_s6 + $0x68] sm:$0xff]  }
 0x6d6   :  { %v1348_v4 = vrot.slane %v1341_v1, %v4543_v39  ;;  %4031 = vmatprep.subr.bf16.mxu1 %v4311_v5  ;;  %v4183_v62 = vld [vmem:[%s5147_s6 + $0x28] sm:$0xff]   ;;  %v4185_v1 = vld [vmem:[%s5147_s6 + $0x30] sm:$0xff]  }
 0x6d7   :  { %v1332_v3 = vrot.slane %v1318_v63, %v4543_v39  ;;  %v4184_v63 = vld [vmem:[%s5147_s6 + $0x70] sm:$0xff]  }
 0x6d9   :  { %v1333_v6 = vcombine.low %v1325_v2, %v1332_v3  ;;  %v4186_v2 = vld [vmem:[%s5147_s6 + $0x78] sm:$0xff]  }
 0x6da   :  { %v4187_v3 = vld [vmem:[%s5147_s6 + $0x38] sm:$0xff]  }
 0x6db   :  { %v1351_v45 = vpack.c.bf16 %v1348_v4, %v1333_v6  ;;  %v4771_v4 = vsub.s32 0, %v4540_v33  ;;  %v1462_v6 = vld [vmem:[%s5148_s8] sm:$0x3] }
 0x6dd   :  { %4028 = vmatmul.mubr.msk.bf16.vlgmr.msra.gmra.mrb[12].mxu0 %vm149_vm0, %v1351_v45  ;;  %v4777_v45 = vsub.s32 1, %v4540_v33 }
 0x6de   :  { %3878 = vmatpush3.bf16.msra.mxu0 %v4173_v52 }
 0x6df   :  { %3879 = vmatprep.subr.bf16.mxu0 %v4174_v16 }
 0x6e2   :  { %3880 = vmatpush3.bf16.msra.mxu0 %v4175_v53 }
 0x6e3   :  { %3881 = vmatprep.subr.bf16.mxu0 %v4176_v54 }
 0x6e6   :  { %3882 = vmatpush3.bf16.msra.mxu0 %v4177_v56 }
 0x6e7   :  { %3883 = vmatprep.subr.bf16.mxu0 %v4178_v57 }
 0x6ea   :  { %3884 = vmatpush3.bf16.msra.mxu0 %v4179_v58 }
 0x6eb   :  { %3885 = vmatprep.subr.bf16.mxu0 %v4180_v59 }
 0x6ee   :  { %3886 = vmatpush3.bf16.msra.mxu0 %v4181_v60 }
 0x6ef   :  { %3887 = vmatprep.subr.bf16.mxu0 %v4182_v61 }
 0x6f2   :  { %3888 = vmatpush3.bf16.msra.mxu0 %v4183_v62 }
 0x6f3   :  { %3889 = vmatprep.subr.bf16.mxu0 %v4184_v63 }
 0x6f6   :  { %3890 = vmatpush3.bf16.msra.mxu0 %v4185_v1 }
 0x6f7   :  { %3891 = vmatprep.subr.bf16.mxu0 %v4186_v2 }
 0x6fa   :  { %3892 = vmatpush3.bf16.msra.mxu0 %v4187_v3 }
 0x6fb   :  { %4055 = vmatprep.subr.bf16.mxu0 %v4311_v5 }
 0x7b0   :  { %v1419_v8 = vpop.f32.mrb[12].mxu0 }
 0x7b1   :  { %v1420_v9 = vadd.f32 %v3660_v7, %v1419_v8  ;;  %v4029_v10 = vpop.f32.mrb[13].mxu0  ;;  %v1472_v8 = vrot.slane %v1462_v6, %v4777_v45 }
 0x7b2   :  { %v1422_v11 = vpop.f32.mrb[14].mxu0 }
 0x7b3   :  { %v4680_v12 = vadd.f32 %v1420_v9, %v4462_v51  ;;  %v1423_v13 = vadd.f32 %v3660_v7, %v1422_v11  ;;  %v4030_v14 = vpop.f32.mrb[15].mxu0  ;;  %v1468_v7 = vrot.slane %v1462_v6, %v4771_v4 }
 0x7b5   :  { %v4683_v15 = vadd.f32 %v1423_v13, %v4466_v55  ;;  %v1428_v17 = vsel %vm149_vm0, %v4680_v12, 0.0 }
 0x7b6   :  { %1429 = vadd.xlane.f32.xlu0 %v1428_v17 }
 0x7b7   :  { %v1431_v18 = vsel %vm197_vm1, %v4683_v15, 0.0 }
 0x7b8   :  { %1432 = vadd.xlane.f32.xlu1 %v1431_v18 }
 0x843   :  { %v1430_v19 = vpop.xlane.xlu0 %1429 }
 0x844   :  { %v1434_v20 = vmul.f32 0.015625, %v1430_v19 }
 0x845   :  { %v1433_v21 = vpop.xlane.xlu1 %1432 }
 0x846   :  { %v1436_v22 = vsub.f32 %v4680_v12, %v1434_v20  ;;  %v1435_v51 = vmul.f32 0.015625, %v1433_v21 }
 0x848   :  { %v1437_v23 = vsub.f32 %v4683_v15, %v1435_v51  ;;  %v1438_v24 = vmul.f32 %v1436_v22, %v1436_v22 }
 0x84a   :  { %v1440_v55 = vsel %vm149_vm0, %v1438_v24, 0.0  ;;  %v1439_v25 = vmul.f32 %v1437_v23, %v1437_v23 }
 0x84b   :  { %1441 = vadd.xlane.f32.xlu0 %v1440_v55 }
 0x84c   :  { %v1443_v26 = vsel %vm197_vm1, %v1439_v25, 0.0 }
 0x84d   :  { %1444 = vadd.xlane.f32.xlu1 %v1443_v26 }
 0x8d8   :  { %v1442_v36 = vpop.xlane.xlu0 %1441 }
 0x8d9   :  { %v1446_v37 = vmul.f32 0.015625, %v1442_v36 }
 0x8da   :  { %v1445_v38 = vpop.xlane.xlu1 %1444 }
 0x8db   :  { %v1448_v40 = vadd.f32 1e-05, %v1446_v37  ;;  %v1447_v41 = vmul.f32 0.015625, %v1445_v38 }
 0x8dd   :  { %4256 = vrsqrt.f32 %v1448_v40  ;;  %v1449_v42 = vadd.f32 1e-05, %v1447_v41 }
 0x8df   :  { %4258 = vrsqrt.f32 %v1449_v42 }
 0x8e7   :  { %v4257_v43 = vpop.eup %4256 }
 0x8e8   :  { %v1452_v47 = vmul.f32 %v4257_v43, %v1436_v22 }
 0x8e9   :  { %v4259_v46 = vpop.eup %4258 }
 0x8ea   :  { %v1453_v48 = vmul.f32 %v4259_v46, %v1437_v23 }
 0x8ec   :  { %v1463_v49 = vpack.c.bf16 %v1453_v48, %v1452_v47  ;;  %v3680_v48 = vld [vmem:[%s5145_s7 + $0x4] ss:$0 sm:$0xff] }
 0x8ee   :  { %3674 = vmatmul.mubr.msk.bf16.vlgmr.msra.gmra.mrb[20].mxu1 %vm149_vm0, %v1463_v49 }
 0x8ef   :  { %4039 = vmatprep.mubr.msk.bf16.mxu1 %vm4312_vm2, %v4311_v5 }
 0x9c1   :  { %v1552_v9 = vpop.f32.mrb[20].mxu1 }
 0x9c2   :  { %v1553_v10 = vadd.f32 %v1552_v9, %v1468_v7  ;;  %v1554_v11 = vpop.f32.mrb[21].mxu1  ;;  %v4189_v9 = vld [vmem:[%s5144_s4 + $0xc0] sm:$0xff]  }
 0x9c3   :  { %v1555_v13 = vadd.f32 %v1554_v11, %v1472_v8  ;;  %v1556_v14 = vpop.f32.mrb[22].mxu1  ;;  %v4191_v11 = vld [vmem:[%s5144_s4 + $0xc8] sm:$0xff]  }
 0x9c4   :  { %v3675_v17 = vmul.f32 -1.702, %v1553_v10  ;;  %v1557_v18 = vadd.f32 %v1556_v14, %v1468_v7  ;;  %v1558_v19 = vpop.f32.mrb[23].mxu1  ;;  %v4193_v14 = vld [vmem:[%s5144_s4 + $0xd0] sm:$0xff]  }
 0x9c5   :  { %v3676_v20 = vmul.f32 -1.702, %v1555_v13  ;;  %v1559_v21 = vadd.f32 %v1558_v19, %v1472_v8  ;;  %v4188_v8 = vld [vmem:[%s5144_s4 + $0x80] sm:$0xff]  }
 0x9c6   :  { %v1569_v22 = vmul.f32 1.442695, %v3675_v17  ;;  %v3677_v51 = vmul.f32 -1.702, %v1557_v18  ;;  %4032 = vmatpush3.bf16.msra.mxu1 %v4188_v8  ;;  %v4194_v17 = vld [vmem:[%s5144_s4 + $0x98] sm:$0xff]  }
 0x9c7   :  { %v1571_v23 = vmul.f32 1.442695, %v3676_v20  ;;  %v3678_v24 = vmul.f32 -1.702, %v1559_v21  ;;  %4033 = vmatprep.subr.bf16.mxu1 %v4311_v5 }
 0x9c8   :  { %4260 = vpow2.f32 %v1569_v22  ;;  %v1573_v33 = vmul.f32 1.442695, %v3677_v51 }
 0x9c9   :  { %4262 = vpow2.f32 %v1571_v23  ;;  %v1575_v55 = vmul.f32 1.442695, %v3678_v24 }
 0x9ca   :  { %4264 = vpow2.f32 %v1573_v33 }
 0x9cb   :  { %4266 = vpow2.f32 %v1575_v55 }
 0x9d2   :  { %v4261_v25 = vpop.eup %4260 }
 0x9d3   :  { %v4263_v26 = vpop.eup %4262  ;;  %v1577_v27 = vadd.f32 1.0, %v4261_v25 }
 0x9d4   :  { %v4265_v28 = vpop.eup %4264  ;;  %v1578_v29 = vadd.f32 1.0, %v4263_v26  ;;  %v4196_v26 = vld [vmem:[%s5144_s4 + $0xa0] sm:$0xff]  }
 0x9d5   :  { %v4267_v30 = vpop.eup %4266  ;;  %4268 = vrcp.f32 %v1577_v27  ;;  %v1579_v31 = vadd.f32 1.0, %v4265_v28  ;;  %v4197_v28 = vld [vmem:[%s5144_s4 + $0xa8] sm:$0xff]  }
 0x9d6   :  { %4270 = vrcp.f32 %v1578_v29  ;;  %v1580_v32 = vadd.f32 1.0, %v4267_v30  ;;  %v4198_v29 = vld [vmem:[%s5144_s4 + $0xb0] sm:$0xff]   ;;  %v4199_v30 = vld [vmem:[%s5144_s4 + $0xb8] sm:$0xff]  }
 0x9d7   :  { %4272 = vrcp.f32 %v1579_v31  ;;  %v3706_v31 = vld [vmem:[%s5145_s7 + $0x5] ss:$0 sm:$0xff] }
 0x9d8   :  { %4274 = vrcp.f32 %v1580_v32  ;;  %v3736_v32 = vld [vmem:[%s5145_s7 + $0x7] ss:$0 sm:$0xff] }
 0x9df   :  { %v4269_v34 = vpop.eup %4268 }
 0x9e0   :  { %v4271_v35 = vpop.eup %4270  ;;  %v1589_v38 = vmul.f32 %v4269_v34, %v1553_v10  ;;  %v4190_v10 = vld [vmem:[%s5144_s4 + $0x88] sm:$0xff]  }
 0x9e1   :  { %v4273_v36 = vpop.eup %4272  ;;  %v1590_v41 = vmul.f32 %v4271_v35, %v1555_v13  ;;  %4034 = vmatpush3.bf16.msra.mxu1 %v4190_v10  ;;  %v4192_v13 = vld [vmem:[%s5144_s4 + $0x90] sm:$0xff]  }
 0x9e2   :  { %v4275_v37 = vpop.eup %4274  ;;  %v1591_v40 = vmul.f32 %v4273_v36, %v1557_v18  ;;  %4035 = vmatprep.subr.bf16.mxu1 %v4311_v5  ;;  %v4195_v18 = vld [vmem:[%s5144_s4 + $0xd8] sm:$0xff]  }
 0x9e3   :  { %v1592_v42 = vmul.f32 %v4275_v37, %v1559_v21 }
 0x9e4   :  { %v1627_v43 = vpack.c.bf16 %v1591_v40, %v1589_v38 }
 0x9e5   :  { %v1628_v46 = vpack.c.bf16 %v1592_v42, %v1590_v41  ;;  %4036 = vmatpush3.bf16.msra.mxu1 %v4192_v13 }
 0x9e6   :  { %4037 = vmatprep.subr.bf16.mxu1 %v4311_v5 }
 0x9e7   :  { %1763 = vmatprep.mubr.bf16.mxu0 %v1628_v46 }
 0x9e8   :  { %1764 = vmatmul.mubr.bf16.vlgmr.msra.gmra.mrb[16].mxu0 %v1627_v43 }
 0x9e9   :  { %4063 = vmatprep.mubr.msk.bf16.mxu0 %vm4312_vm2, %v4311_v5  ;;  %4056 = vmatpush3.bf16.msra.mxu0 %v4189_v9 }
 0x9ea   :  { %4057 = vmatprep.subr.bf16.mxu0 %v4311_v5  ;;  %4038 = vmatpush3.bf16.msra.mxu1 %v4194_v17 }
 0x9eb   :  { %4043 = vmatprep.subr.bf16.mxu1 %v4311_v5 }
 0x9ed   :  { %4058 = vmatpush3.bf16.msra.mxu0 %v4191_v11 }
 0x9ee   :  { %4059 = vmatprep.subr.bf16.mxu0 %v4311_v5 }
 0x9f1   :  { %4060 = vmatpush3.bf16.msra.mxu0 %v4193_v14 }
 0x9f2   :  { %4061 = vmatprep.subr.bf16.mxu0 %v4311_v5 }
 0x9f5   :  { %4062 = vmatpush3.bf16.msra.mxu0 %v4195_v18 }
 0x9f6   :  { %4079 = vmatprep.subr.bf16.mxu0 %v4311_v5 }
 0xabb   :  { %v3893_v47 = vpop.f32.mrb[16].mxu0 }
 0xabc   :  { %v3894_v49 = vpop.f32.mrb[17].mxu0 }
 0xabd   :  { %v3895_v50 = vadd.f32 %v3894_v49, %v3893_v47  ;;  %v3896_v52 = vpop.f32.mrb[18].mxu0 }
 0xabe   :  { %v3897_v16 = vpop.f32.mrb[19].mxu0 }
 0xabf   :  { %v1766_v53 = vadd.f32 %v3895_v50, %v3680_v48  ;;  %v3898_v54 = vadd.f32 %v3897_v16, %v3896_v52 }
 0xac1   :  { %v4787_v56 = vadd.f32 %v1766_v53, %v4680_v12  ;;  %v1769_v57 = vadd.f32 %v3898_v54, %v3680_v48 }
 0xac3   :  { %v4790_v58 = vadd.f32 %v1769_v57, %v4683_v15  ;;  %v1774_v59 = vsel %vm149_vm0, %v4787_v56, 0.0 }
 0xac4   :  { %1775 = vadd.xlane.f32.xlu0 %v1774_v59 }
 0xac5   :  { %v1777_v60 = vsel %vm197_vm1, %v4790_v58, 0.0 }
 0xac6   :  { %1778 = vadd.xlane.f32.xlu1 %v1777_v60 }
 0xb51   :  { %v1776_v61 = vpop.xlane.xlu0 %1775 }
 0xb52   :  { %v1780_v62 = vmul.f32 0.015625, %v1776_v61 }
 0xb53   :  { %v1779_v63 = vpop.xlane.xlu1 %1778 }
 0xb54   :  { %v1782_v1 = vsub.f32 %v4787_v56, %v1780_v62  ;;  %v1781_v2 = vmul.f32 0.015625, %v1779_v63 }
 0xb56   :  { %v1783_v12 = vsub.f32 %v4790_v58, %v1781_v2  ;;  %v1784_v3 = vmul.f32 %v1782_v1, %v1782_v1 }
 0xb58   :  { %v1786_v15 = vsel %vm149_vm0, %v1784_v3, 0.0  ;;  %v1785_v6 = vmul.f32 %v1783_v12, %v1783_v12 }
 0xb59   :  { %1787 = vadd.xlane.f32.xlu0 %v1786_v15 }
 0xb5a   :  { %v1789_v7 = vsel %vm197_vm1, %v1785_v6, 0.0 }
 0xb5b   :  { %1790 = vadd.xlane.f32.xlu1 %v1789_v7 }
 0xbe6   :  { %v1788_v19 = vpop.xlane.xlu0 %1787 }
 0xbe7   :  { %v1792_v20 = vmul.f32 0.015625, %v1788_v19 }
 0xbe8   :  { %v1791_v21 = vpop.xlane.xlu1 %1790 }
 0xbe9   :  { %v1794_v22 = vadd.f32 1e-05, %v1792_v20  ;;  %v1793_v51 = vmul.f32 0.015625, %v1791_v21 }
 0xbeb   :  { %4276 = vrsqrt.f32 %v1794_v22  ;;  %v1795_v23 = vadd.f32 1e-05, %v1793_v51 }
 0xbed   :  { %4278 = vrsqrt.f32 %v1795_v23 }
 0xbf5   :  { %v4277_v24 = vpop.eup %4276 }
 0xbf6   :  { %v1798_v55 = vmul.f32 %v4277_v24, %v1782_v1 }
 0xbf7   :  { %v4279_v33 = vpop.eup %4278 }
 0xbf8   :  { %v1799_v25 = vmul.f32 %v4279_v33, %v1783_v12 }
 0xbfa   :  { %v1811_v27 = vpack.c.bf16 %v1799_v25, %v1798_v55  ;;  %v3721_v25 = vld [vmem:[%s5145_s7 + $0x6] ss:$0 sm:$0xff] }
 0xbfc   :  { %4040 = vmatmul.mubr.msk.bf16.vlgmr.msra.gmra.mrb[24].mxu1 %vm149_vm0, %v1811_v27  ;;  %4064 = vmatmul.mubr.msk.bf16.vlgmr.msra.gmra.mrb[20].mxu0 %vm149_vm0, %v1811_v27 }
 0xbfd   :  { %4044 = vmatpush3.bf16.msra.mxu1 %v4196_v26  ;;  %4051 = vmatprep.mubr.msk.bf16.mxu1 %vm4312_vm2, %v4311_v5 }
 0xbfe   :  { %4045 = vmatprep.subr.bf16.mxu1 %v4311_v5  ;;  %4081 = vmatprep.mubr.msk.bf16.mxu0 %vm4312_vm2, %v4311_v5 }
 0xc01   :  { %4046 = vmatpush3.bf16.msra.mxu1 %v4197_v28 }
 0xc02   :  { %4047 = vmatprep.subr.bf16.mxu1 %v4311_v5 }
 0xc05   :  { %4048 = vmatpush3.bf16.msra.mxu1 %v4198_v29 }
 0xc06   :  { %4049 = vmatprep.subr.bf16.mxu1 %v4311_v5 }
 0xc09   :  { %4050 = vmatpush3.bf16.msra.mxu1 %v4199_v30 }
 0xc0a   :  { %4067 = vmatprep.subr.bf16.mxu1 %v4311_v5 }
 0xc0c   :  { %4052 = vmatmul.mubr.msk.bf16.vlgmr.msra.gmra.mrb[28].mxu1 %vm149_vm0, %v1811_v27 }
 0xc0d   :  { %4069 = vmatprep.mubr.msk.bf16.mxu1 %vm4312_vm2, %v4311_v5 }
 0xccf   :  { %v1879_v34 = vpop.f32.mrb[24].mxu1  ;;  %v2043_v35 = vpop.f32.mrb[20].mxu0 }
 0xcd0   :  { %v1880_v36 = vadd.f32 %v3706_v31, %v1879_v34  ;;  %v2044_v37 = vadd.f32 %v3736_v32, %v2043_v35  ;;  %v4041_v38 = vpop.f32.mrb[25].mxu1  ;;  %v4065_v40 = vpop.f32.mrb[21].mxu0 }
 0xcd1   :  { %v1882_v41 = vpop.f32.mrb[26].mxu1  ;;  %v2046_v42 = vpop.f32.mrb[22].mxu0 }
 0xcd2   :  { %v2052_v43 = vcombine.high %v1880_v36, %v1880_v36  ;;  %v2059_v46 = vrot.slane %v1880_v36, %v4543_v39  ;;  %v2362_v47 = vcombine.high %v2044_v37, %v2044_v37  ;;  %v2369_v48 = vrot.slane %v2044_v37, %v4543_v39  ;;  %v4042_v49 = vpop.f32.mrb[27].mxu1  ;;  %v4066_v50 = vpop.f32.mrb[23].mxu0 }
 0xcd3   :  { %v1883_v52 = vadd.f32 %v3706_v31, %v1882_v41  ;;  %v2047_v60 = vadd.f32 %v3736_v32, %v2046_v42 }
 0xcd4   :  { %v2066_v16 = vrot.slane %v2052_v43, %v4543_v39  ;;  %v2067_v53 = vcombine.high %v2059_v46, %v2059_v46  ;;  %v2376_v54 = vrot.slane %v2362_v47, %v4543_v39  ;;  %v2377_v57 = vcombine.high %v2369_v48, %v2369_v48 }
 0xcd5   :  { %v2107_v59 = vrot.slane %v1883_v52, %v4543_v39  ;;  %v2385_v1 = vrot.slane %v2369_v48, %v4543_v39  ;;  %v2417_v10 = vrot.slane %v2047_v60, %v4543_v39  ;;  %v2075_v11 = vrot.slane %v2059_v46, %v4543_v39 }
 0xcd6   :  { %v2068_v61 = vcombine.high %v2066_v16, %v2066_v16  ;;  %v4869_v62 = vrot.slane %v2066_v16, %v4543_v39  ;;  %v2378_v63 = vcombine.high %v2376_v54, %v2376_v54  ;;  %v2392_v2 = vrot.slane %v2376_v54, %v4543_v39 }
 0xcd7   :  { %v2399_v12 = vrot.slane %v2377_v57, %v4543_v39  ;;  %v2089_v3 = vrot.slane %v2067_v53, %v4543_v39  ;;  %v2108_v7 = vcombine.high %v2107_v59, %v2107_v59  ;;  %v2115_v19 = vrot.slane %v2107_v59, %v4543_v39 }
 0xcd8   :  { %v2096_v15 = vrot.slane %v2068_v61, %v4543_v39  ;;  %v2098_v6 = vcombine.high %v4869_v62, %v4869_v62  ;;  %v2406_v8 = vrot.slane %v2378_v63, %v4543_v39  ;;  %v2408_v17 = vcombine.high %v2392_v2, %v2392_v2 }
 0xcd9   :  { %v2433_v9 = vcombine.low %v2385_v1, %v2399_v12  ;;  %v3744_v13 = vcombine.high %v2385_v1, %v2399_v12  ;;  %v2123_v20 = vcombine.low %v2075_v11, %v2089_v3  ;;  %v2122_v51 = vrot.slane %v2108_v7, %v4543_v39 }
 0xcda   :  { %v2162_v14 = vcombine.low %v2096_v15, %v2098_v6  ;;  %v2100_v22 = vcombine.high %v2096_v15, %v2096_v15  ;;  %v3742_v23 = vcombine.high %v2075_v11, %v2089_v3  ;;  %v2455_v24 = vrot.slane %v2392_v2, %v4543_v39 }
 0xcdb   :  { %v2441_v18 = vrot.slane %v2433_v9, %v4543_v39  ;;  %v2448_v21 = vrot.slane %v3744_v13, %v4543_v39  ;;  %v2410_v33 = vcombine.high %v2406_v8, %v2406_v8  ;;  %v2418_v55 = vcombine.high %v2417_v10, %v2417_v10 }
 0xcdc   :  { %v2163_v27 = vcombine.low %v2100_v22, %v2115_v19  ;;  %v2472_v28 = vcombine.low %v2406_v8, %v2408_v17  ;;  %v2170_v29 = vrot.slane %v2162_v14, %v4543_v39  ;;  %v2425_v30 = vrot.slane %v2417_v10, %v4543_v39 }
 0xcdd   :  { %v2456_v26 = vcombine.low %v2441_v18, %v2448_v21  ;;  %v2432_v31 = vrot.slane %v2418_v55, %v4543_v39  ;;  %v2184_v35 = vrot.slane %v2122_v51, %v4543_v39  ;;  %v2131_v40 = vrot.slane %v2123_v20, %v4543_v39 }
 0xcde   :  { %v2177_v34 = vrot.slane %v2163_v27, %v4543_v39  ;;  %v2138_v41 = vrot.slane %v3742_v23, %v4543_v39  ;;  %v2470_v42 = vrot.slane %v2455_v24, %v4543_v39  ;;  %v2473_v43 = vcombine.low %v2410_v33, %v2425_v30 }
 0xcdf   :  { %v1961_v32 = vpop.f32.mrb[28].mxu1  ;;  %v2463_v38 = vrot.slane %v2456_v26, %v4543_v39  ;;  %v2480_v16 = vrot.slane %v2472_v28, %v4543_v39  ;;  %v2494_v54 = vrot.slane %v2432_v31, %v4543_v39  ;;  %v2199_v60 = vrot.slane %v2184_v35, %v4543_v39 }
 0xce0   :  { %v1962_v36 = vadd.f32 %v3721_v25, %v1961_v32  ;;  %v4053_v37 = vpop.f32.mrb[29].mxu1  ;;  %v2185_v47 = vcombine.low %v2170_v29, %v2177_v34  ;;  %v2487_v53 = vrot.slane %v2473_v43, %v4543_v39  ;;  %v2146_v27 = vcombine.low %v2131_v40, %v2138_v41 }
 0xce1   :  { %v1964_v46 = vpop.f32.mrb[30].mxu1  ;;  %v2471_v57 = vcombine.low %v2463_v38, %v2470_v42  ;;  %v2509_v9 = vrot.slane %v2494_v54, %v4543_v39  ;;  %v2145_v34 = vrot.slane %v4869_v62, %v4543_v39 }
 0xce2   :  { %v2207_v48 = vcombine.high %v1962_v36, %v1962_v36  ;;  %v2214_v49 = vrot.slane %v1962_v36, %v4543_v39  ;;  %v1965_v50 = vadd.f32 %v3721_v25, %v1964_v46  ;;  %v4054_v52 = vpop.f32.mrb[31].mxu1  ;;  %v2192_v59 = vrot.slane %v2185_v47, %v4543_v39 }
 0xce3   :  { %v2495_v1 = vcombine.low %v2480_v16, %v2487_v53  ;;  %v2513_v3 = vpack.c.bf16 %v2471_v57, %v2471_v57  ;;  %v2153_v37 = vrot.slane %v2146_v27, %v4543_v39  ;;  %v2160_v42 = vrot.slane %v2145_v34, %v4543_v39 }
 0xce4   :  { %v2221_v61 = vrot.slane %v2207_v48, %v4543_v39  ;;  %v2222_v63 = vcombine.high %v2214_v49, %v2214_v49  ;;  %v2230_v2 = vrot.slane %v2214_v49, %v4543_v39  ;;  %v2262_v12 = vrot.slane %v1965_v50, %v4543_v39 }
 0xce5   :  { %v2200_v8 = vcombine.low %v2192_v59, %v2199_v60  ;;  %v2631_v11 = vand.u32 %v2513_v3, %v4624_v44  ;;  %v2502_v13 = vrot.slane %v2495_v1, %v4543_v39  ;;  %v2161_v47 = vcombine.low %v2153_v37, %v2160_v42 }
 0xce6   :  { %v2223_v15 = vcombine.high %v2221_v61, %v2221_v61  ;;  %v2237_v6 = vrot.slane %v2221_v61, %v4543_v39  ;;  %v2244_v7 = vrot.slane %v2222_v63, %v4543_v39  ;;  %v2263_v10 = vcombine.high %v2262_v12, %v2262_v12 }
 0xce7   :  { %v2270_v21 = vrot.slane %v2262_v12, %v4543_v39  ;;  %4080 = vmatpush3.bf16.msra.mxu0 %v2631_v11  ;;  %v2510_v51 = vcombine.low %v2502_v13, %v2509_v9  ;;  %v2203_v62 = vpack.c.bf16 %v2161_v47, %v2161_v47  ;;  %v2204_v52 = vpack.c.bf16 %v2200_v8, %v2200_v8 }
 0xce8   :  { %v2251_v14 = vrot.slane %v2223_v15, %v4543_v39  ;;  %v2253_v17 = vcombine.high %v2237_v6, %v2237_v6  ;;  %v2278_v18 = vcombine.low %v2230_v2, %v2244_v7  ;;  %v3743_v19 = vcombine.high %v2230_v2, %v2244_v7  ;;  %4091 = vmatprep.subr.bf16.mxu0 %v4311_v5 }
 0xce9   :  { %v2300_v20 = vrot.slane %v2237_v6, %v4543_v39  ;;  %v2277_v22 = vrot.slane %v2263_v10, %v4543_v39  ;;  %v2514_v50 = vpack.c.bf16 %v2510_v51, %v2510_v51 }
 0xcea   :  { %v2286_v23 = vrot.slane %v2278_v18, %v4543_v39  ;;  %v2293_v24 = vrot.slane %v3743_v19, %v4543_v39  ;;  %v2317_v33 = vcombine.low %v2251_v14, %v2253_v17  ;;  %v2255_v55 = vcombine.high %v2251_v14, %v2251_v14  ;;  %v4200_v18 = vld [vmem:[%s5144_s4 + $0xe0] sm:$0xff]   ;;  %v4201_v19 = vld [vmem:[%s5144_s4 + $0xe8] sm:$0xff]  }
 0xceb   :  { %v2339_v28 = vrot.slane %v2277_v22, %v4543_v39  ;;  %v2315_v31 = vrot.slane %v2300_v20, %v4543_v39  ;;  %v2677_v16 = vand.u32 %v2514_v50, %v4624_v44  ;;  %v4202_v20 = vld [vmem:[%s5144_s4 + $0xf0] sm:$0xff]  }
 0xcec   :  { %v2318_v25 = vcombine.low %v2255_v55, %v2270_v21  ;;  %v2301_v26 = vcombine.low %v2286_v23, %v2293_v24  ;;  %v2325_v32 = vrot.slane %v2317_v33, %v4543_v39 }
 0xced   :  { %v2354_v41 = vrot.slane %v2339_v28, %v4543_v39 }
 0xcee   :  { %v2332_v29 = vrot.slane %v2318_v25, %v4543_v39  ;;  %v2308_v30 = vrot.slane %v2301_v26, %v4543_v39 }
 0xcf0   :  { %v2316_v35 = vcombine.low %v2308_v30, %v2315_v31  ;;  %v2340_v36 = vcombine.low %v2325_v32, %v2332_v29 }
 0xcf2   :  { %v2358_v38 = vpack.c.bf16 %v2316_v35, %v2316_v35  ;;  %v2347_v40 = vrot.slane %v2340_v36, %v4543_v39 }
 0xcf4   :  { %v2519_v43 = vsel %vm149_vm0, %v2358_v38, 0  ;;  %v2355_v46 = vcombine.low %v2347_v40, %v2354_v41 }
 0xcf5   :  { %4068 = vmatpush3.bf16.xpose.msra.mxu1 %v2519_v43 }
 0xcf6   :  { %4073 = vmatprep.subr.bf16.mxu1 %v4311_v5  ;;  %v2359_v48 = vpack.c.bf16 %v2355_v46, %v2355_v46 }
 0xcf8   :  { %v2565_v49 = vsel %vm149_vm0, %v2359_v48, 0 }
 0xcfc   :  { %4070 = vmatmul.mubr.msk.bf16.vlgmr.msra.gmra.mrb[32].mxu1 %vm149_vm0, %v2203_v62 }
 0xcfd   :  { %4074 = vmatpush3.bf16.xpose.msra.mxu1 %v2565_v49  ;;  %4075 = vmatprep.mubr.msk.bf16.mxu1 %vm4312_vm2, %v4311_v5 }
 0xcfe   :  { %4085 = vmatprep.subr.bf16.mxu1 %v4311_v5 }
 0xd04   :  { %4076 = vmatmul.mubr.msk.bf16.vlgmr.msra.gmra.mrb[36].mxu1 %vm149_vm0, %v2204_v52 }
 0xd05   :  { %4086 = vmatpush3.bf16.msra.mxu1 %v2677_v16  ;;  %4087 = vmatprep.mubr.msk.bf16.mxu1 %vm4312_vm2, %v4311_v5 }
 0xdcf   :  { %v2555_v53 = vpop.f32.mrb[32].mxu1 }
 0xdd0   :  { %v4071_v54 = vpop.f32.mrb[33].mxu1  ;;  %v2607_v57 = vsel %vm1072_vm5, %v2555_v53, -inf }
 0xdd1   :  { %2608 = vmax.xlane.f32.xlu0 %v2607_v57  ;;  %v2558_v59 = vpop.f32.mrb[34].mxu1 }
 0xdd2   :  { %v4072_v60 = vpop.f32.mrb[35].mxu1 }
 0xdd7   :  { %v2601_v61 = vpop.f32.mrb[36].mxu1 }
 0xdd8   :  { %v4077_v63 = vpop.f32.mrb[37].mxu1  ;;  %v2610_v1 = vsel %vm1072_vm5, %v2601_v61, -inf }
 0xdd9   :  { %2611 = vmax.xlane.f32.xlu1 %v2610_v1  ;;  %v2604_v2 = vpop.f32.mrb[38].mxu1 }
 0xdda   :  { %v4078_v44 = vpop.f32.mrb[39].mxu1 }
 0xe5e   :  { %v2609_v12 = vpop.xlane.xlu0 %2608 }
 0xe5f   :  { %v2613_v3 = vsub.f32 %v2555_v53, %v2609_v12 }
 0xe61   :  { %v2615_v15 = vmul.f32 1.442695, %v2613_v3 }
 0xe63   :  { %4280 = vpow2.f32 %v2615_v15 }
 0xe66   :  { %v2612_v6 = vpop.xlane.xlu1 %2611 }
 0xe67   :  { %v2614_v7 = vsub.f32 %v2601_v61, %v2612_v6 }
 0xe69   :  { %v2617_v8 = vmul.f32 1.442695, %v2614_v7 }
 0xe6b   :  { %4282 = vpow2.f32 %v2617_v8  ;;  %v3759_v8 = vld [vmem:[%s5145_s7 + $0x8] ss:$0 sm:$0xff] }
 0xe6d   :  { %v4281_v9 = vpop.eup %4280 }
 0xe6e   :  { %v2619_v10 = vsel %vm1072_vm5, %v4281_v9, 0.0  ;;  %v2625_v11 = vpack.c.bf16 %v4281_v9, %v4281_v9 }
 0xe6f   :  { %2620 = vadd.xlane.f32.xlu0 %v2619_v10 }
 0xe70   :  { %4082 = vmatmul.mubr.msk.bf16.vlgmr.msra.gmra.mrb[24].mxu0 %vm1093_vm6, %v2625_v11 }
 0xe71   :  { %4099 = vmatprep.mubr.msk.bf16.mxu0 %vm4312_vm2, %v4311_v5  ;;  %4092 = vmatpush3.bf16.msra.mxu0 %v4200_v18 }
 0xe72   :  { %4093 = vmatprep.subr.bf16.mxu0 %v4311_v5 }
 0xe75   :  { %v4283_v13 = vpop.eup %4282  ;;  %4094 = vmatpush3.bf16.msra.mxu0 %v4201_v19 }
 0xe76   :  { %v2622_v14 = vsel %vm1072_vm5, %v4283_v13, 0.0  ;;  %v2626_v17 = vpack.c.bf16 %v4283_v13, %v4283_v13  ;;  %4095 = vmatprep.subr.bf16.mxu0 %v4311_v5 }
 0xe77   :  { %2623 = vadd.xlane.f32.xlu1 %v2622_v14 }
 0xe78   :  { %4088 = vmatmul.mubr.msk.bf16.vlgmr.msra.gmra.mrb[40].mxu1 %vm1093_vm6, %v2626_v17 }
 0xe79   :  { %3081 = vmatprep.mubr.bf16.mxu1 %v4310_v0  ;;  %4096 = vmatpush3.bf16.msra.mxu0 %v4202_v20  ;;  %v4203_v0 = vld [vmem:[%s5144_s4 + $0xf8] sm:$0xff]  }
 0xe7a   :  { %4097 = vmatprep.subr.bf16.mxu0 %v4311_v5 }
 0xe7d   :  { %4098 = vmatpush3.bf16.msra.mxu0 %v4203_v0 }
 0xefc   :  { %v2621_v21 = vpop.xlane.xlu0 %2620 }
 0xefd   :  { %4284 = vrcp.f32 %v2621_v21 }
 0xf04   :  { %v2624_v22 = vpop.xlane.xlu1 %2623 }
 0xf05   :  { %4286 = vrcp.f32 %v2624_v22 }
 0xf07   :  { %v4285_v51 = vpop.eup %4284 }
 0xf0f   :  { %v4287_v30 = vpop.eup %4286 }
 0xf43   :  { %v2667_v23 = vpop.f32.mrb[24].mxu0 }
 0xf44   :  { %v2721_v24 = vmul.f32 %v4285_v51, %v2667_v23  ;;  %v4083_v33 = vpop.f32.mrb[25].mxu0 }
 0xf45   :  { %v2670_v55 = vpop.f32.mrb[26].mxu0 }
 0xf46   :  { %v2732_v25 = vrot.slane %v2721_v24, %v4543_v39  ;;  %v4084_v26 = vpop.f32.mrb[27].mxu0  ;;  %v2725_v28 = vcombine.high %v2721_v24, %v2721_v24 }
 0xf48   :  { %v2740_v27 = vcombine.high %v2732_v25, %v2732_v25  ;;  %v2747_v32 = vrot.slane %v2732_v25, %v4543_v39  ;;  %v2739_v36 = vrot.slane %v2725_v28, %v4543_v39  ;;  %v4209_v28 = vld [vmem:[%s5146_s5 + $0x54] ss:$8 sps:$4 sm:$0xff]  }
 0xf4a   :  { %v2761_v29 = vrot.slane %v2740_v27, %v4543_v39  ;;  %v2754_v62 = vrot.slane %v2739_v36, %v4543_v39  ;;  %v4204_v27 = vld [vmem:[%s5146_s5 + $0x40] ss:$8 sps:$4 sm:$0xff]  }
 0xf4b   :  { %v2713_v31 = vpop.f32.mrb[40].mxu1 }
 0xf4c   :  { %v2722_v34 = vmul.f32 %v4287_v30, %v2713_v31  ;;  %v4089_v35 = vpop.f32.mrb[41].mxu1  ;;  %v2814_v38 = vcombine.low %v2747_v32, %v2761_v29  ;;  %v3758_v40 = vcombine.high %v2747_v32, %v2761_v29  ;;  %v4207_v29 = vld [vmem:[%s5146_s5 + $0x50] ss:$8 sps:$4 sm:$0xff]   ;;  %v4212_v30 = vld [vmem:[%s5146_s5 + $0x64] ss:$8 sps:$4 sm:$0xff]  }
 0xf4d   :  { %v2716_v37 = vpop.f32.mrb[42].mxu1  ;;  %v4210_v31 = vld [vmem:[%s5146_s5 + $0x60] ss:$8 sps:$4 sm:$0xff]   ;;  %v4215_v32 = vld [vmem:[%s5146_s5 + $0x74] ss:$8 sps:$4 sm:$0xff]  }
 0xf4e   :  { %v2764_v41 = vcombine.high %v2722_v34, %v2722_v34  ;;  %v2771_v42 = vrot.slane %v2722_v34, %v4543_v39  ;;  %v4090_v43 = vpop.f32.mrb[43].mxu1  ;;  %v2824_v49 = vrot.slane %v2814_v38, %v4543_v39  ;;  %v2831_v50 = vrot.slane %v3758_v40, %v4543_v39  ;;  %v4213_v34 = vld [vmem:[%s5146_s5 + $0x70] ss:$8 sps:$4 sm:$0xff]  }
 0xf50   :  { %v2778_v46 = vrot.slane %v2764_v41, %v4543_v39  ;;  %v2779_v47 = vcombine.high %v2771_v42, %v2771_v42  ;;  %v2786_v48 = vrot.slane %v2771_v42, %v4543_v39  ;;  %v2846_v60 = vcombine.low %v2824_v49, %v2831_v50  ;;  %v4217_v49 = vld [vmem:[%s5147_s6 + $0x80] sm:$0xff]   ;;  %v4218_v50 = vld [vmem:[%s5147_s6 + $0xc8] sm:$0xff]  }
 0xf52   :  { %v2800_v52 = vrot.slane %v2779_v47, %v4543_v39  ;;  %v2801_v16 = vcombine.high %v2786_v48, %v2786_v48  ;;  %v2816_v53 = vcombine.low %v2754_v62, %v2786_v48  ;;  %v2793_v54 = vrot.slane %v2778_v46, %v4543_v39  ;;  %v4216_v62 = vld [vmem:[%s5147_s6 + $0xc0] sm:$0xff]  }
 0xf53   :  { %v2854_v12 = vrot.slane %v2846_v60, %v4543_v39  ;;  %3927 = vmatprep.subr.bf16.mxu0 %v4216_v62  ;;  %v4225_v60 = vld [vmem:[%s5147_s6 + $0xa0] sm:$0xff]  }
 0xf54   :  { %v2802_v57 = vcombine.high %v2800_v52, %v2800_v52  ;;  %v2817_v59 = vcombine.low %v2800_v52, %v2801_v16  ;;  %v2838_v61 = vrot.slane %v2816_v53, %v4543_v39  ;;  %v4219_v52 = vld [vmem:[%s5147_s6 + $0x88] sm:$0xff]   ;;  %v4220_v16 = vld [vmem:[%s5147_s6 + $0xd0] sm:$0xff]  }
 0xf55   :  { %v4221_v53 = vld [vmem:[%s5147_s6 + $0x90] sm:$0xff]  }
 0xf56   :  { %v2845_v63 = vrot.slane %v2817_v59, %v4543_v39  ;;  %v2863_v1 = vcombine.low %v2802_v57, %v2793_v54  ;;  %v4222_v54 = vld [vmem:[%s5147_s6 + $0xd8] sm:$0xff]   ;;  %v4224_v59 = vld [vmem:[%s5147_s6 + $0xe0] sm:$0xff]  }
 0xf57   :  { %v4223_v57 = vld [vmem:[%s5147_s6 + $0x98] sm:$0xff]  }
 0xf58   :  { %v2847_v2 = vcombine.low %v2838_v61, %v2845_v63  ;;  %v2870_v44 = vrot.slane %v2863_v1, %v4543_v39  ;;  %v4226_v61 = vld [vmem:[%s5147_s6 + $0xe8] sm:$0xff]   ;;  %v4228_v1 = vld [vmem:[%s5147_s6 + $0xf0] sm:$0xff]  }
 0xf59   :  { %v4227_v63 = vld [vmem:[%s5147_s6 + $0xa8] sm:$0xff]  }
 0xf5a   :  { %v2861_v3 = vrot.slane %v2847_v2, %v4543_v39  ;;  %v2877_v15 = vrot.slane %v2870_v44, %v4543_v39  ;;  %v4229_v2 = vld [vmem:[%s5147_s6 + $0xb0] sm:$0xff]   ;;  %v4230_v44 = vld [vmem:[%s5147_s6 + $0xf8] sm:$0xff]  }
 0xf5c   :  { %v2862_v6 = vcombine.low %v2854_v12, %v2861_v3  ;;  %v4231_v12 = vld [vmem:[%s5147_s6 + $0xb8] sm:$0xff]   ;;  %v3773_v3 = vld [vmem:[%s5148_s8 + $0x2] sm:$0x3] }
 0xf5e   :  { %v2880_v7 = vpack.c.bf16 %v2877_v15, %v2862_v6  ;;  %v2999_v15 = vrot.slane %v3773_v3, %v4771_v4  ;;  %v3003_v6 = vrot.slane %v3773_v3, %v4777_v45 }
 0xf60   :  { %4100 = vmatmul.mubr.msk.bf16.vlgmr.msra.gmra.mrb[28].mxu0 %vm149_vm0, %v2880_v7 }
 0xf61   :  { %3928 = vmatpush3.bf16.msra.mxu0 %v4217_v49 }
 0xf62   :  { %3929 = vmatprep.subr.bf16.mxu0 %v4218_v50 }
 0xf65   :  { %3930 = vmatpush3.bf16.msra.mxu0 %v4219_v52 }
 0xf66   :  { %3931 = vmatprep.subr.bf16.mxu0 %v4220_v16 }
 0xf69   :  { %3932 = vmatpush3.bf16.msra.mxu0 %v4221_v53 }
 0xf6a   :  { %3933 = vmatprep.subr.bf16.mxu0 %v4222_v54 }
 0xf6d   :  { %3934 = vmatpush3.bf16.msra.mxu0 %v4223_v57 }
 0xf6e   :  { %3935 = vmatprep.subr.bf16.mxu0 %v4224_v59 }
 0xf71   :  { %3936 = vmatpush3.bf16.msra.mxu0 %v4225_v60 }
 0xf72   :  { %3937 = vmatprep.subr.bf16.mxu0 %v4226_v61 }
 0xf75   :  { %3938 = vmatpush3.bf16.msra.mxu0 %v4227_v63 }
 0xf76   :  { %3939 = vmatprep.subr.bf16.mxu0 %v4228_v1 }
 0xf79   :  { %3940 = vmatpush3.bf16.msra.mxu0 %v4229_v2 }
 0xf7a   :  { %3941 = vmatprep.subr.bf16.mxu0 %v4230_v44 }
 0xf7d   :  { %3942 = vmatpush3.bf16.msra.mxu0 %v4231_v12 }
0x1033   :  { %v2948_v9 = vpop.f32.mrb[28].mxu0 }
0x1034   :  { %v2949_v10 = vadd.f32 %v3759_v8, %v2948_v9  ;;  %v4101_v11 = vpop.f32.mrb[29].mxu0 }
0x1035   :  { %v2951_v13 = vpop.f32.mrb[30].mxu0 }
0x1036   :  { %v4988_v14 = vadd.f32 %v2949_v10, %v4787_v56  ;;  %v2952_v17 = vadd.f32 %v3759_v8, %v2951_v13  ;;  %v4102_v18 = vpop.f32.mrb[31].mxu0 }
0x1038   :  { %v2957_v19 = vsel %vm149_vm0, %v4988_v14, 0.0  ;;  %v2956_v20 = vadd.f32 %v2952_v17, %v4790_v58  ;;  %v4206_v58 = vld [vmem:[%s5146_s5 + $0x44] ss:$8 sps:$4 sm:$0xff]  }
0x1039   :  { %2958 = vadd.xlane.f32.xlu0 %v2957_v19  ;;  %3049 = vmatprep.subr.bf16.mxu1 %v4206_v58 }
0x103a   :  { %v2960_v0 = vsel %vm197_vm1, %v2956_v20, 0.0  ;;  %3050 = vmatpush1.bf16.msra.mxu1 %v4204_v27 }
0x103b   :  { %2961 = vadd.xlane.f32.xlu1 %v2960_v0  ;;  %3051 = vmatprep.subr.bf16.mxu1 %v4209_v28 }
0x103e   :  { %3052 = vmatpush1.bf16.msra.mxu1 %v4207_v29 }
0x103f   :  { %3053 = vmatprep.subr.bf16.mxu1 %v4212_v30 }
0x1042   :  { %3054 = vmatpush1.bf16.msra.mxu1 %v4210_v31 }
0x1043   :  { %3055 = vmatprep.subr.bf16.mxu1 %v4215_v32 }
0x1046   :  { %3056 = vmatpush1.bf16.msra.mxu1 %v4213_v34 }
0x1047   :  { %4103 = vmatprep.subr.bf16.mxu1 %v4311_v5 }
0x10c6   :  { %v2959_v21 = vpop.xlane.xlu0 %2958 }
0x10c7   :  { %v2963_v22 = vmul.f32 0.015625, %v2959_v21 }
0x10c8   :  { %v2962_v51 = vpop.xlane.xlu1 %2961 }
0x10c9   :  { %v2965_v23 = vsub.f32 %v4988_v14, %v2963_v22  ;;  %v2964_v24 = vmul.f32 0.015625, %v2962_v51 }
0x10cb   :  { %v2966_v33 = vsub.f32 %v2956_v20, %v2964_v24  ;;  %v2967_v56 = vmul.f32 %v2965_v23, %v2965_v23 }
0x10cd   :  { %v2969_v55 = vsel %vm149_vm0, %v2967_v56, 0.0  ;;  %v2968_v25 = vmul.f32 %v2966_v33, %v2966_v33 }
0x10ce   :  { %2970 = vadd.xlane.f32.xlu0 %v2969_v55 }
0x10cf   :  { %v2972_v26 = vsel %vm197_vm1, %v2968_v25, 0.0 }
0x10d0   :  { %2973 = vadd.xlane.f32.xlu1 %v2972_v26 }
0x115b   :  { %v2971_v35 = vpop.xlane.xlu0 %2970 }
0x115c   :  { %v2975_v36 = vmul.f32 0.015625, %v2971_v35 }
0x115d   :  { %v2974_v37 = vpop.xlane.xlu1 %2973 }
0x115e   :  { %v2977_v38 = vadd.f32 1e-05, %v2975_v36  ;;  %v2976_v40 = vmul.f32 0.015625, %v2974_v37 }
0x1160   :  { %4288 = vrsqrt.f32 %v2977_v38  ;;  %v2978_v41 = vadd.f32 1e-05, %v2976_v40 }
0x1162   :  { %4290 = vrsqrt.f32 %v2978_v41 }
0x116a   :  { %v4289_v42 = vpop.eup %4288 }
0x116b   :  { %v2981_v46 = vmul.f32 %v4289_v42, %v2965_v23  ;;  %v3820_v42 = vld [vmem:[%s5145_s7 + $0x9] ss:$0 sm:$0xff] }
0x116c   :  { %v4291_v43 = vpop.eup %4290 }
0x116d   :  { %v2982_v47 = vmul.f32 %v4291_v43, %v2966_v33 }
0x116f   :  { %v2994_v48 = vpack.c.bf16 %v2982_v47, %v2981_v46 }
0x1171   :  { %3782 = vmatmul.mubr.msk.bf16.vlgmr.msra.gmra.mrb[44].mxu1 %vm149_vm0, %v2994_v48 }
0x1172   :  { %4111 = vmatprep.mubr.msk.bf16.mxu1 %vm4312_vm2, %v4311_v5 }
0x1244   :  { %v3083_v7 = vpop.f32.mrb[44].mxu1 }
0x1245   :  { %v3084_v8 = vadd.f32 %v3083_v7, %v2999_v15  ;;  %v3085_v9 = vpop.f32.mrb[45].mxu1 }
0x1246   :  { %v3086_v10 = vadd.f32 %v3085_v9, %v3003_v6  ;;  %v3087_v11 = vpop.f32.mrb[46].mxu1 }
0x1247   :  { %v3783_v13 = vmul.f32 -1.702, %v3084_v8  ;;  %v3088_v17 = vadd.f32 %v3087_v11, %v2999_v15  ;;  %v3089_v18 = vpop.f32.mrb[47].mxu1  ;;  %v4232_v11 = vld [vmem:[%s5149_s9] sm:$0xff]  }
0x1248   :  { %v3784_v19 = vmul.f32 -1.702, %v3086_v10  ;;  %v3090_v20 = vadd.f32 %v3089_v18, %v3003_v6  ;;  %4104 = vmatpush3.bf16.msra.mxu1 %v4232_v11 }
0x1249   :  { %v3100_v0 = vmul.f32 1.442695, %v3783_v13  ;;  %v3785_v21 = vmul.f32 -1.702, %v3088_v17  ;;  %4105 = vmatprep.subr.bf16.mxu1 %v4311_v5  ;;  %v4233_v13 = vld [vmem:[%s5149_s9 + $0x8] sm:$0xff]  }
0x124a   :  { %v3102_v22 = vmul.f32 1.442695, %v3784_v19  ;;  %v3786_v51 = vmul.f32 -1.702, %v3090_v20 }
0x124b   :  { %4292 = vpow2.f32 %v3100_v0  ;;  %v3104_v23 = vmul.f32 1.442695, %v3785_v21 }
0x124c   :  { %4294 = vpow2.f32 %v3102_v22  ;;  %v3106_v24 = vmul.f32 1.442695, %v3786_v51  ;;  %4106 = vmatpush3.bf16.msra.mxu1 %v4233_v13 }
0x124d   :  { %4296 = vpow2.f32 %v3104_v23  ;;  %4107 = vmatprep.subr.bf16.mxu1 %v4311_v5 }
0x124e   :  { %4298 = vpow2.f32 %v3106_v24 }
0x1255   :  { %v4293_v33 = vpop.eup %4292 }
0x1256   :  { %v4295_v56 = vpop.eup %4294  ;;  %v3108_v55 = vadd.f32 1.0, %v4293_v33 }
0x1257   :  { %v4297_v25 = vpop.eup %4296  ;;  %v3109_v26 = vadd.f32 1.0, %v4295_v56 }
0x1258   :  { %v4299_v58 = vpop.eup %4298  ;;  %4300 = vrcp.f32 %v3108_v55  ;;  %v3110_v27 = vadd.f32 1.0, %v4297_v25 }
0x1259   :  { %4302 = vrcp.f32 %v3109_v26  ;;  %v3111_v28 = vadd.f32 1.0, %v4299_v58  ;;  %v4236_v58 = vld [vmem:[%s5150_s11] sm:$0xff]  }
0x125a   :  { %4304 = vrcp.f32 %v3110_v27 }
0x125b   :  { %4306 = vrcp.f32 %v3111_v28  ;;  %v4239_v28 = vld [vmem:[%s5150_s11 + $0x18] sm:$0xff]  }
0x1262   :  { %v4301_v29 = vpop.eup %4300 }
0x1263   :  { %v4303_v30 = vpop.eup %4302  ;;  %v3120_v34 = vmul.f32 %v4301_v29, %v3084_v8  ;;  %v3837_v29 = vld [vmem:[%s5151_s10] ss:$0 sm:$0xff] }
0x1264   :  { %v4305_v31 = vpop.eup %4304  ;;  %v3121_v36 = vmul.f32 %v4303_v30, %v3086_v10 }
0x1265   :  { %v4307_v32 = vpop.eup %4306  ;;  %v3122_v35 = vmul.f32 %v4305_v31, %v3088_v17  ;;  %v4234_v17 = vld [vmem:[%s5149_s9 + $0x10] sm:$0xff]  }
0x1266   :  { %v3123_v37 = vmul.f32 %v4307_v32, %v3090_v20  ;;  %4108 = vmatpush3.bf16.msra.mxu1 %v4234_v17 }
0x1267   :  { %v3159_v38 = vpack.c.bf16 %v3122_v35, %v3120_v34  ;;  %4109 = vmatprep.subr.bf16.mxu1 %v4311_v5 }
0x1268   :  { %v3160_v40 = vpack.c.bf16 %v3123_v37, %v3121_v36 }
0x126a   :  { %3295 = vmatprep.mubr.bf16.mxu0 %v3160_v40 }
0x126b   :  { %3296 = vmatmul.mubr.bf16.vlgmr.msra.gmra.mrb[32].mxu0 %v3159_v38  ;;  %v3843_v38 = vld [vmem:[%s5152_s12] ss:$0 sm:$0xff] }
0x133e   :  { %v3943_v41 = vpop.f32.mrb[32].mxu0 }
0x133f   :  { %v3944_v43 = vpop.f32.mrb[33].mxu0 }
0x1340   :  { %v3945_v46 = vadd.f32 %v3944_v43, %v3943_v41  ;;  %v3946_v47 = vpop.f32.mrb[34].mxu0 }
0x1341   :  { %v3947_v48 = vpop.f32.mrb[35].mxu0 }
0x1342   :  { %v3298_v62 = vadd.f32 %v3945_v46, %v3820_v42 }
0x1344   :  { %v3303_v49 = vadd.f32 %v3298_v62, %v4988_v14 }
0x1346   :  { %v3305_v50 = vcombine.high %v3303_v49, %v3303_v49  ;;  %v3312_v52 = vrot.slane %v3303_v49, %v4543_v39 }
0x1348   :  { %v3319_v16 = vrot.slane %v3305_v50, %v4543_v39  ;;  %v3327_v54 = vrot.slane %v3312_v52, %v4543_v39 }
0x134a   :  { %v3320_v53 = vcombine.high %v3319_v16, %v3319_v16 }
0x134c   :  { %v3334_v57 = vrot.slane %v3320_v53, %v4543_v39 }
0x134e   :  { %v3337_v59 = vcombine.low %v3327_v54, %v3334_v57 }
0x1350   :  { %v3344_v60 = vrot.slane %v3337_v59, %v4543_v39 }
0x1352   :  { %v3351_v61 = vrot.slane %v3344_v60, %v4543_v39 }
0x1354   :  { %v3353_v63 = vsel %vm197_vm1, %v3351_v61, 0.0 }
0x1355   :  { %3354 = vadd.xlane.f32.xlu0 %v3353_v63 }
0x13e2   :  { %v3355_v1 = vpop.xlane.xlu0 %3354 }
0x13e3   :  { %v3356_v14 = vmul.f32 0.015625, %v3355_v1 }
0x13e5   :  { %v3361_v2 = vrot.slane %v3356_v14, %v4771_v4  ;;  %v3365_v44 = vrot.slane %v3356_v14, %v4777_v45 }
0x13e7   :  { %v3368_v12 = vsub.f32 %v3327_v54, %v3361_v2  ;;  %v3369_v3 = vsub.f32 %v3334_v57, %v3365_v44 }
0x13e9   :  { %v3370_v15 = vmul.f32 %v3368_v12, %v3368_v12  ;;  %v3371_v6 = vmul.f32 %v3369_v3, %v3369_v3 }
0x13eb   :  { %v3374_v7 = vcombine.low %v3370_v15, %v3371_v6 }
0x13ed   :  { %v3381_v8 = vrot.slane %v3374_v7, %v4543_v39 }
0x13ef   :  { %v3388_v9 = vrot.slane %v3381_v8, %v4543_v39  ;;  %v4235_v39 = vld [vmem:[%s5149_s9 + $0x18] sm:$0xff]  }
0x13f0   :  { %4110 = vmatpush3.bf16.msra.mxu1 %v4235_v39 }
0x13f1   :  { %v3390_v10 = vsel %vm197_vm1, %v3388_v9, 0.0  ;;  %4115 = vmatprep.subr.bf16.mxu1 %v4311_v5 }
0x13f2   :  { %3391 = vadd.xlane.f32.xlu1 %v3390_v10 }
0x147f   :  { %v3392_v18 = vpop.xlane.xlu1 %3391 }
0x1480   :  { %v3393_v19 = vmul.f32 0.015625, %v3392_v18 }
0x1482   :  { %v3394_v20 = vadd.f32 1e-05, %v3393_v19 }
0x1484   :  { %4308 = vrsqrt.f32 %v3394_v20 }
0x148e   :  { %v4309_v0 = vpop.eup %4308 }
0x148f   :  { %v3400_v21 = vrot.slane %v4309_v0, %v4771_v4  ;;  %v3404_v22 = vrot.slane %v4309_v0, %v4777_v45  ;;  %v4237_v4 = vld [vmem:[%s5150_s11 + $0x8] sm:$0xff]   ;;  %v4238_v45 = vld [vmem:[%s5150_s11 + $0x10] sm:$0xff]  }
0x1491   :  { %v3407_v51 = vmul.f32 %v3400_v21, %v3368_v12  ;;  %v3408_v23 = vmul.f32 %v3404_v22, %v3369_v3 }
0x1493   :  { %v3418_v24 = vpack.c.bf16 %v3407_v51, %v3407_v51  ;;  %v3419_v33 = vpack.c.bf16 %v3408_v23, %v3408_v23 }
0x1495   :  { %v3429_v56 = vunpack.c.l.b16 %v3419_v33  ;;  %v3428_v55 = vunpack.c.l.b16 %v3418_v24 }
0x1497   :  { %v3430_v25 = vrot.slane %v3429_v56, 7 }
0x1499   :  { %v3432_v26 = vsel %vm3431_vm7, %v3430_v25, %v3428_v55 }
0x149a   :  { %v3433_v27 = vpack.c.b16 %v3432_v26, %v3432_v26 }
0x149c   :  { %4112 = vmatmul.mubr.msk.bf16.vlgmr.msra.gmra.mrb[48].mxu1 %vm149_vm0, %v3433_v27 }
0x149d   :  { %4116 = vmatpush3.bf16.msra.mxu1 %v4236_v58  ;;  %4123 = vmatprep.mubr.msk.bf16.mxu1 %vm4312_vm2, %v4311_v5 }
0x149e   :  { %4117 = vmatprep.subr.bf16.mxu1 %v4311_v5 }
0x14a1   :  { %4118 = vmatpush3.bf16.msra.mxu1 %v4237_v4 }
0x14a2   :  { %4119 = vmatprep.subr.bf16.mxu1 %v4311_v5 }
0x14a5   :  { %4120 = vmatpush3.bf16.msra.mxu1 %v4238_v45 }
0x14a6   :  { %4121 = vmatprep.subr.bf16.mxu1 %v4311_v5 }
0x14a9   :  { %4122 = vmatpush3.bf16.msra.mxu1 %v4239_v28 }
0x156f   :  { %v3495_v30 = vpop.f32.mrb[48].mxu1 }
0x1570   :  { %v3496_v31 = vadd.f32 %v3837_v29, %v3495_v30  ;;  %v4113_v32 = vpop.f32.mrb[49].mxu1 }
0x1571   :  { %v3498_v34 = vpop.f32.mrb[50].mxu1 }
0x1572   :  { %v3501_v35 = vmax.f32 %v3496_v31, 0.0  ;;  %v4114_v36 = vpop.f32.mrb[51].mxu1 }
0x1574   :  { %v3511_v37 = vpack.c.bf16 %v3501_v35, %v3501_v35 }
0x1576   :  { %4124 = vmatmul.mubr.msk.bf16.vlgmr.msra.gmra.mrb[52].mxu1 %vm149_vm0, %v3511_v37 }
0x1649   :  { %v3579_v40 = vpop.f32.mrb[52].mxu1 }
0x164a   :  { %v3580_v5 = vadd.f32 %v3843_v38, %v3579_v40  ;;  %v4125_v41 = vpop.f32.mrb[53].mxu1 }
0x164b   :  { %v3582_v42 = vpop.f32.mrb[54].mxu1 }
0x164c   :  { %3586 = vst.msk [vmem:[%s5153_s13] sm:$0x3] %vm3585_vm8, %v3580_v5  ;;  %v4126_v43 = vpop.f32.mrb[55].mxu1 }

</bundles_post_ra>
